<compile_context>
chip_gen: v5e
topology: v5e:2x2
jax: 0.10.0
libtpu: 0.0.40
codegen_flags: <defaults>
</compile_context>

<pallas_src>
import jax
import jax.numpy as jnp
from jax.experimental import pallas as pl
from jax.experimental.pallas import tpu as pltpu

# Hyperparameters mirroring GraphSPNNaiveCatF.__init__(nd_n, nk_n, nk_e, ns, ni, num_pieces)
ND_N = 8                 # nd_n : number of graph nodes
ND_E = ND_N ** 2         # nd_e : number of (directed) edge slots
NK_N = 5                 # nk_n : node categories
NK_E = 4                 # nk_e : edge categories
NS   = 8                 # ns   : num_sums (absorbed into the simplified circuit)
NI   = 16                # ni   : num_input_distributions (mixture components)
ND   = ND_N + ND_E       # total variables fed to the circuit (72)
NK   = max(NK_N, NK_E)   # shared categorical support size K (5)

NEG = -1e30              # finite stand-in for log(0)
TB_MAX = 2048            # max batch tile (rows per grid step)
BATCH_ALIGN = 128        # batch tiles multiples of 128: int8 sublane packing + aligned blocks


def _round_up(x, m):
    return (x + m - 1) // m * m


def _choose_tiling(B):
    """Pick (padded batch, batch tile). >=2 grid steps whenever Bp exceeds one tile
    so the 'parallel' batch axis can be sharded across both v7x TensorCores."""
    Bp = _round_up(max(B, BATCH_ALIGN), BATCH_ALIGN)
    if Bp <= BATCH_ALIGN:
        return Bp, Bp
    tb = min(TB_MAX, _round_up((Bp + 1) // 2, BATCH_ALIGN))
    Bp = _round_up(Bp, tb)
    return Bp, tb


# ----------------------------------------------------------------------------
# Pallas kernel: rebuild the stacked one-hot mask on the VPU (lane-concat of
# NK compares), ONE deep-K bf16 hi/lo MXU matmul against the stacked leaf
# table, then in-kernel logsumexp mixture.
# ----------------------------------------------------------------------------
def spn_mixture_kernel(z_ref, lth_ref, ltl_ref, logw_ref, out_ref):
    # z    : (TB, NDp)       int8  category index per variable (padding = NK -> matches nothing)
    # lth  : (NK*NDp, NIp)   bf16  hi part of stacked leaf table, row c*NDp+v = log_theta[v,:,c]
    # ltl  : (NK*NDp, NIp)   bf16  lo part (lt - f32(lth)); padding rows/cols = 0
    # logw : (1, NIp)        f32   mixture log-weights (padding columns = NEG)
    # out  : (TB, 1)         f32   per-sample log-likelihood
    z = z_ref[...].astype(jnp.int32)                       # cheap VPU unpack, hidden under DMA

    # Stacked one-hot mask: mask[:, c*NDp + v] = (z[:, v] == c).  Exact in bf16.
    mask = jnp.concatenate(
        [(z == c).astype(jnp.bfloat16) for c in range(NK)], axis=-1)   # (TB, NK*NDp)

    # One deep-K MXU pass, bf16 operands, f32 accumulation; hi/lo split recovers
    # near-f32 accuracy of the leaf table.
    comp = jnp.dot(mask, lth_ref[...], preferred_element_type=jnp.float32)
    comp = comp + jnp.dot(mask, ltl_ref[...], preferred_element_type=jnp.float32)

    comp = comp + logw_ref[...]                            # broadcast mixture log-weights
    m = jnp.max(comp, axis=-1, keepdims=True)              # (TB, 1)
    s = jnp.sum(jnp.exp(comp - m), axis=-1, keepdims=True)
    out_ref[...] = m + jnp.log(s)


def _spn_pallas_call(z_p, lt_hi, lt_lo, logw_p, tb):
    Bp, NDp = z_p.shape
    KD, NIp = lt_hi.shape                                  # KD = NK * NDp
    grid = (Bp // tb,)

    cost = pl.CostEstimate(
        flops=4 * Bp * KD * NIp,                           # two bf16 dots (hi + lo)
        transcendentals=Bp * NIp,                          # exp in the logsumexp
        bytes_accessed=Bp * NDp * 1 + 2 * KD * NIp * 2 + NIp * 4 + Bp * 4,
    )

    return pl.pallas_call(
        spn_mixture_kernel,
        out_shape=jax.ShapeDtypeStruct((Bp, 1), jnp.float32),
        grid=grid,
        in_specs=[
            pl.BlockSpec((tb, NDp), lambda i: (i, 0)),     # evidence: streamed per batch tile
            pl.BlockSpec((KD, NIp), lambda i: (0, 0)),     # leaf table hi: resident (constant idx)
            pl.BlockSpec((KD, NIp), lambda i: (0, 0)),     # leaf table lo: resident (constant idx)
            pl.BlockSpec((1, NIp), lambda i: (0, 0)),      # mixture log-weights: resident
        ],
        out_specs=pl.BlockSpec((tb, 1), lambda i: (i, 0)),
        compiler_params=pltpu.CompilerParams(
            dimension_semantics=("parallel",),             # batch axis -> megacore on v7x
            vmem_limit_bytes=32 * 1024 * 1024,
        ),
        cost_estimate=cost,
    )(z_p, lt_hi, lt_lo, logw_p)


# ----------------------------------------------------------------------------
# Forward wrapper (glue in plain JAX: ohe2cat equivalent, padding, table build)
# ----------------------------------------------------------------------------
@jax.jit
def graphspn_forward(x, a, log_theta, log_w):
    """x: (B, ND_N, NK_N) one-hot, a: (B, ND_N, ND_N, NK_E) one-hot.
    Returns (B, 1) log-likelihoods (EinsumNetwork forward output)."""
    B = x.shape[0]

    # ohe2cat + cat((x.unsqueeze(1), a), 1).view(-1, nd_n + nd_e): compact int8 indices.
    x_cat = jnp.argmax(x, axis=-1).astype(jnp.int8)                      # (B, ND_N)
    a_cat = jnp.argmax(a, axis=-1).reshape(B, ND_E).astype(jnp.int8)     # (B, ND_E)
    z = jnp.concatenate([x_cat, a_cat], axis=1)                          # (B, ND) int8

    NDp = _round_up(ND, 128)     # 128
    NIp = _round_up(NI, 128)     # 128
    Bp, tb = _choose_tiling(B)

    # Padding (extra variables and extra batch rows) uses sentinel NK: matches no
    # category inside the kernel, so it contributes exactly 0 to every component.
    z_p = jnp.full((Bp, NDp), NK, jnp.int8).at[:B, :ND].set(z)

    # Stacked leaf table: lt2[c*NDp + v, k] = log_theta[v, k, c]; padded entries = 0.
    # Clamp true log(0) to a finite NEG so 0-mask * -inf cannot produce NaN in the matmul.
    lt = jnp.transpose(log_theta, (2, 0, 1))                             # (NK, ND, NI)
    lt = jnp.maximum(lt, NEG)
    lt_p = jnp.zeros((NK, NDp, NIp), jnp.float32).at[:, :ND, :NI].set(lt)
    lt2 = lt_p.reshape(NK * NDp, NIp)                                    # (NK*NDp, NIp)

    # bf16 hi/lo split: native-rate MXU with near-f32 table accuracy.
    lt_hi = lt2.astype(jnp.bfloat16)
    lt_lo = (lt2 - lt_hi.astype(jnp.float32)).astype(jnp.bfloat16)

    logw_p = jnp.full((1, NIp), NEG, jnp.float32).at[0, :NI].set(log_w)

    out = _spn_pallas_call(z_p, lt_hi, lt_lo, logw_p, tb)
    return out[:B]


# ----------------------------------------------------------------------------
# Pure-JAX reference (argmax gather path, mirrors the PyTorch semantics)
# ----------------------------------------------------------------------------
def graphspn_forward_ref(x, a, log_theta, log_w):
    B = x.shape[0]
    x_cat = jnp.argmax(x, axis=-1)                               # (B, ND_N)
    a_cat = jnp.argmax(a, axis=-1).reshape(B, ND_E)              # (B, ND_E)
    z = jnp.concatenate([x_cat, a_cat], axis=1)                  # (B, ND)
    lt = jnp.transpose(log_theta, (0, 2, 1))                     # (ND, NK, NI)
    gathered = lt[jnp.arange(ND)[None, :], z]                    # (B, ND, NI)
    comp = gathered.sum(axis=1) + log_w[None, :]                 # (B, NI)
    return jax.scipy.special.logsumexp(comp, axis=-1, keepdims=True)


if __name__ == "__main__":
    key = jax.random.PRNGKey(0)
    k_x, k_a, k_th, k_w = jax.random.split(key, 4)

    B = 2
    # deterministic one-hot inputs
    x_idx = jax.random.randint(k_x, (B, ND_N), 0, NK_N)
    a_idx = jax.random.randint(k_a, (B, ND_N, ND_N), 0, NK_E)
    x = jax.nn.one_hot(x_idx, NK_N, dtype=jnp.float32)           # (2, 8, 5)
    a = jax.nn.one_hot(a_idx, NK_E, dtype=jnp.float32)           # (2, 8, 8, 4)

    # deterministic parameters (categorical leaves + mixture weights)
    log_theta = jax.nn.log_softmax(
        jax.random.normal(k_th, (ND, NI, NK), jnp.float32), axis=-1)
    log_w = jax.nn.log_softmax(
        jax.random.normal(k_w, (NI,), jnp.float32), axis=-1)

    out = graphspn_forward(x, a, log_theta, log_w)
    out = jax.block_until_ready(out)

    ref = graphspn_forward_ref(x, a, log_theta, log_w)
    assert out.shape == (B, 1)
    # atol deliberately loosened to 1e-3: the bf16 hi/lo leaf-table split carries
    # ~1e-4-level absolute error over 72 summed log-probs (values ~-120).
    assert jnp.allclose(out, ref, rtol=1e-5, atol=1e-3), (out, ref)

    print("KERNEL_OK")
</pallas_src>

<mosaic_0001>
module attributes {stable_mosaic.version = 11 : i64} {
  func.func @spn_mixture_kernel(%arg0: i32, %arg1: memref<128x128xi8, #tpu.memory_space<vmem>>, %arg2: memref<640x128xbf16, #tpu.memory_space<vmem>>, %arg3: memref<640x128xbf16, #tpu.memory_space<vmem>>, %arg4: memref<1x128xf32, #tpu.memory_space<vmem>>, %arg5: memref<128x1xf32, #tpu.memory_space<vmem>>) attributes {dimension_semantics = [#tpu.dimension_semantics<parallel>], iteration_bounds = array<i64: 1>, scalar_prefetch = 0 : i64, scratch_operands = 0 : i64, tpu.core_type = #tpu.core_type<tc>, window_params = [{transform_indices = @transform_0, window_bounds = array<i64: 128, 128>}, {pipeline_mode = #tpu.pipeline_mode<synchronous>, transform_indices = @transform_1, window_bounds = array<i64: 640, 128>}, {pipeline_mode = #tpu.pipeline_mode<synchronous>, transform_indices = @transform_2, window_bounds = array<i64: 640, 128>}, {pipeline_mode = #tpu.pipeline_mode<synchronous>, transform_indices = @transform_3, window_bounds = array<i64: 1, 128>}, {transform_indices = @transform_4, window_bounds = array<i64: 128, 1>}]} {
    %c0 = arith.constant 0 : index
    %c0_0 = arith.constant 0 : index
    %0 = vector.load %arg1[%c0, %c0_0] : memref<128x128xi8, #tpu.memory_space<vmem>>, vector<128x128xi8>
    %1 = arith.extsi %0 : vector<128x128xi8> to vector<128x128xi32>
    %c0_i32 = arith.constant 0 : i32
    %2 = vector.broadcast %c0_i32 : i32 to vector<128x128xi32>
    %3 = arith.cmpi eq, %1, %2 : vector<128x128xi32>
    %4 = arith.extui %3 : vector<128x128xi1> to vector<128x128xi32>
    %5 = arith.sitofp %4 : vector<128x128xi32> to vector<128x128xf32>
    %6 = arith.truncf %5 : vector<128x128xf32> to vector<128x128xbf16>
    %c1_i32 = arith.constant 1 : i32
    %7 = vector.broadcast %c1_i32 : i32 to vector<128x128xi32>
    %8 = arith.cmpi eq, %1, %7 : vector<128x128xi32>
    %9 = arith.extui %8 : vector<128x128xi1> to vector<128x128xi32>
    %10 = arith.sitofp %9 : vector<128x128xi32> to vector<128x128xf32>
    %11 = arith.truncf %10 : vector<128x128xf32> to vector<128x128xbf16>
    %c2_i32 = arith.constant 2 : i32
    %12 = vector.broadcast %c2_i32 : i32 to vector<128x128xi32>
    %13 = arith.cmpi eq, %1, %12 : vector<128x128xi32>
    %14 = arith.extui %13 : vector<128x128xi1> to vector<128x128xi32>
    %15 = arith.sitofp %14 : vector<128x128xi32> to vector<128x128xf32>
    %16 = arith.truncf %15 : vector<128x128xf32> to vector<128x128xbf16>
    %c3_i32 = arith.constant 3 : i32
    %17 = vector.broadcast %c3_i32 : i32 to vector<128x128xi32>
    %18 = arith.cmpi eq, %1, %17 : vector<128x128xi32>
    %19 = arith.extui %18 : vector<128x128xi1> to vector<128x128xi32>
    %20 = arith.sitofp %19 : vector<128x128xi32> to vector<128x128xf32>
    %21 = arith.truncf %20 : vector<128x128xf32> to vector<128x128xbf16>
    %c4_i32 = arith.constant 4 : i32
    %22 = vector.broadcast %c4_i32 : i32 to vector<128x128xi32>
    %23 = arith.cmpi eq, %1, %22 : vector<128x128xi32>
    %24 = arith.extui %23 : vector<128x128xi1> to vector<128x128xi32>
    %25 = arith.sitofp %24 : vector<128x128xi32> to vector<128x128xf32>
    %26 = arith.truncf %25 : vector<128x128xf32> to vector<128x128xbf16>
    %27 = tpu.concatenate %6, %11, %16, %21, %26 in 1 : vector<128x128xbf16>, vector<128x128xbf16>, vector<128x128xbf16>, vector<128x128xbf16>, vector<128x128xbf16> -> vector<128x640xbf16>
    %c0_1 = arith.constant 0 : index
    %c0_2 = arith.constant 0 : index
    %28 = vector.load %arg2[%c0_1, %c0_2] : memref<640x128xbf16, #tpu.memory_space<vmem>>, vector<640x128xbf16>
    %cst = arith.constant dense<0.000000e+00> : vector<128x128xf32>
    %29 = tpu.matmul %27, %28, %cst {dimension_numbers = #tpu.dot_dimension_numbers<[1], [0], [0], [1], [0, 0, 1, 1], [], []>} : vector<128x640xbf16>, vector<640x128xbf16>, vector<128x128xf32> -> vector<128x128xf32>
    %c0_3 = arith.constant 0 : index
    %c0_4 = arith.constant 0 : index
    %30 = vector.load %arg3[%c0_3, %c0_4] : memref<640x128xbf16, #tpu.memory_space<vmem>>, vector<640x128xbf16>
    %cst_5 = arith.constant dense<0.000000e+00> : vector<128x128xf32>
    %31 = tpu.matmul %27, %30, %cst_5 {dimension_numbers = #tpu.dot_dimension_numbers<[1], [0], [0], [1], [0, 0, 1, 1], [], []>} : vector<128x640xbf16>, vector<640x128xbf16>, vector<128x128xf32> -> vector<128x128xf32>
    %32 = arith.addf %29, %31 : vector<128x128xf32>
    %c0_6 = arith.constant 0 : index
    %c0_7 = arith.constant 0 : index
    %33 = vector.load %arg4[%c0_6, %c0_7] : memref<1x128xf32, #tpu.memory_space<vmem>>, vector<1x128xf32>
    %34 = vector.broadcast %33 : vector<1x128xf32> to vector<128x128xf32>
    %35 = arith.addf %32, %34 : vector<128x128xf32>
    %cst_8 = arith.constant dense<0xFF800000> : vector<128xf32>
    %36 = vector.multi_reduction <maximumf>, %35, %cst_8 [1] : vector<128x128xf32> to vector<128xf32>
    %37 = vector.shape_cast %36 : vector<128xf32> to vector<128x1xf32>
    %38 = vector.broadcast %37 : vector<128x1xf32> to vector<128x128xf32>
    %39 = arith.subf %35, %38 : vector<128x128xf32>
    %40 = math.exp %39 : vector<128x128xf32>
    %cst_9 = arith.constant dense<0.000000e+00> : vector<128xf32>
    %41 = vector.multi_reduction <add>, %40, %cst_9 [1] : vector<128x128xf32> to vector<128xf32>
    %42 = vector.shape_cast %41 : vector<128xf32> to vector<128x1xf32>
    %43 = math.log %42 : vector<128x1xf32>
    %44 = arith.addf %37, %43 : vector<128x1xf32>
    %c0_10 = arith.constant 0 : index
    %c0_11 = arith.constant 0 : index
    %45 = vector.load %arg5[%c0_10, %c0_11] : memref<128x1xf32, #tpu.memory_space<vmem>>, vector<128x1xf32>
    tpu.vector_store %arg5[%c0_10, %c0_11], %44 {strides = array<i32>} : memref<128x1xf32, #tpu.memory_space<vmem>>, vector<128x1xf32>,
    return
  }
  func.func @transform_0(%arg0: i32) -> (i32, i32) {
    %c0_i32 = arith.constant 0 : i32
    %c0_i32_0 = arith.constant 0 : i32
    return %arg0, %c0_i32 : i32, i32
  }
  func.func @transform_1(%arg0: i32) -> (i32, i32) {
    %c0_i32 = arith.constant 0 : i32
    %c0_i32_0 = arith.constant 0 : i32
    %c0_i32_1 = arith.constant 0 : i32
    return %c0_i32, %c0_i32_0 : i32, i32
  }
  func.func @transform_2(%arg0: i32) -> (i32, i32) {
    %c0_i32 = arith.constant 0 : i32
    %c0_i32_0 = arith.constant 0 : i32
    %c0_i32_1 = arith.constant 0 : i32
    return %c0_i32, %c0_i32_0 : i32, i32
  }
  func.func @transform_3(%arg0: i32) -> (i32, i32) {
    %c0_i32 = arith.constant 0 : i32
    %c0_i32_0 = arith.constant 0 : i32
    %c0_i32_1 = arith.constant 0 : i32
    return %c0_i32, %c0_i32_0 : i32, i32
  }
  func.func @transform_4(%arg0: i32) -> (i32, i32) {
    %c0_i32 = arith.constant 0 : i32
    %c0_i32_0 = arith.constant 0 : i32
    return %arg0, %c0_i32 : i32, i32
  }
}

</mosaic_0001>

<bundles_post_ra>
// kernel: graphspn_forward.1
= control target key start
LH: loop header
LB: loop body
LE: loop exit
PB: predicated region body
PF: predicated region fallthrough
CT: control target
= control target key end

     0   :  { %v2490_v16 = vmov 0.0   ;;  %s3485_s2 = inlined_call_operand.vmem [shape: bf16[640,128], index: 2, kind: input, shape index: {}]   ;;  %s3486_s0 = inlined_call_operand.vmem [shape: s8[128,128], index: 0, kind: input, shape index: {}]   ;;  %s3487_s1 = inlined_call_operand.vmem [shape: bf16[640,128], index: 1, kind: input, shape index: {}]   ;;  %s3488_s3 = inlined_call_operand.vmem [shape: f32[1,128], index: 3, kind: input, shape index: {}]   ;;  %s3489_s4 = inlined_call_operand.vmem [shape: f32[128,1], index: 4, kind: output, shape index: {}]  }
   0x1   :  { %v2375_v0 = vld [vmem:[%s3485_s2 + $0x38] sm:$0xff]  ;;  %v2374_v2 = vld [vmem:[%s3485_s2 + $0x30] sm:$0xff]  ;;  %v2373_v4 = vld [vmem:[%s3485_s2 + $0x28] sm:$0xff] }
   0x2   :  { %v2383_v1 = vld [vmem:[%s3485_s2 + $0x78] sm:$0xff]  ;;  %2408 = vmatpush.bf16.msra.mxu2 %v2375_v0  ;;  %v2382_v3 = vld [vmem:[%s3485_s2 + $0x70] sm:$0xff]  ;;  %997 = vmatpush.bf16.msra.mxu0 %v2375_v0  ;;  %v2381_v5 = vld [vmem:[%s3485_s2 + $0x68] sm:$0xff] }
   0x3   :  { %2416 = vmatpush.bf16.msra.mxu3 %v2383_v1  ;;  %1046 = vmatpush.bf16.msra.mxu1 %v2383_v1  ;;  %v19_v6 = vld [vmem:[%s3486_s0 + $0x10] sm:$0xff]  ;;  %v2540_v7 = vld [vmem:[%s3486_s0] sm:$0xff]  ;;  %v2371_v14 = vld [vmem:[%s3485_s2 + $0x18] sm:$0xff] }
   0x4   :  { %v2372_v8 = vld [vmem:[%s3485_s2 + $0x20] sm:$0xff]  ;;  %v2548_v10 = vunpack.c.0.s8 %v19_v6  ;;  %v2550_v11 = vunpack.c.1.s8 %v19_v6  ;;  %v2553_v12 = vunpack.c.0.s8 %v2540_v7  ;;  %v2556_v13 = vunpack.c.1.s8 %v2540_v7  ;;  %v2379_v15 = vld [vmem:[%s3485_s2 + $0x58] sm:$0xff]  ;;  %v2370_v19 = vld [vmem:[%s3485_s2 + $0x10] sm:$0xff] }
   0x5   :  { %v2380_v9 = vld [vmem:[%s3485_s2 + $0x60] sm:$0xff]  ;;  %v2378_v20 = vld [vmem:[%s3485_s2 + $0x50] sm:$0xff]  ;;  %v2369_v33 = vld [vmem:[%s3485_s2 + $0x8] sm:$0xff]  ;;  %v2592_v39 = vunpack.c.2.s8 %v19_v6  ;;  %v2594_v40 = vunpack.c.3.s8 %v19_v6  ;;  %v2603_v49 = vunpack.c.2.s8 %v2540_v7  ;;  %v2606_v50 = vunpack.c.3.s8 %v2540_v7 }
   0x6   :  { %2409 = vmatpush.bf16.msra.mxu2 %v2374_v2  ;;  %998 = vmatpush.bf16.msra.mxu0 %v2374_v2  ;;  %vm45_vm0 = vcmp.eq.s32.totalorder %v2548_v10, 0  ;;  %vm46_vm1 = vcmp.eq.s32.totalorder %v2550_v11, 0  ;;  %vm109_vm2 = vcmp.eq.s32.totalorder %v2548_v10, 1  ;;  %vm110_vm3 = vcmp.eq.s32.totalorder %v2550_v11, 1  ;;  %v2377_v34 = vld [vmem:[%s3485_s2 + $0x48] sm:$0xff]  ;;  %v2368_v45 = vld [vmem:[%s3485_s2] sm:$0xff] }
   0x7   :  { %2417 = vmatpush.bf16.msra.mxu3 %v2382_v3  ;;  %1047 = vmatpush.bf16.msra.mxu1 %v2382_v3  ;;  %vm37_vm4 = vcmp.eq.s32.totalorder %v2553_v12, 0  ;;  %vm38_vm5 = vcmp.eq.s32.totalorder %v2556_v13, 0  ;;  %vm101_vm6 = vcmp.eq.s32.totalorder %v2553_v12, 1  ;;  %vm102_vm7 = vcmp.eq.s32.totalorder %v2556_v13, 1  ;;  %v2376_v46 = vld [vmem:[%s3485_s2 + $0x40] sm:$0xff]  ;;  %v2391_v52 = vld [vmem:[%s3485_s2 + $0xb8] sm:$0xff] }
   0x8   :  { %v1936_v17 = vsel %vm45_vm0, 1.0, %v2490_v16  ;;  %v1937_v18 = vsel %vm46_vm1, 1.0, %v2490_v16  ;;  %v1952_v21 = vsel %vm109_vm2, 1.0, %v2490_v16  ;;  %v1953_v22 = vsel %vm110_vm3, 1.0, %v2490_v16  ;;  %v2399_v53 = vld [vmem:[%s3485_s2 + $0xf8] sm:$0xff]  ;;  %v2390_v60 = vld [vmem:[%s3485_s2 + $0xb0] sm:$0xff] }
   0x9   :  { %v1928_v23 = vsel %vm37_vm4, 1.0, %v2490_v16  ;;  %v1929_v24 = vsel %vm38_vm5, 1.0, %v2490_v16  ;;  %v1944_v25 = vsel %vm101_vm6, 1.0, %v2490_v16  ;;  %v1945_v26 = vsel %vm102_vm7, 1.0, %v2490_v16  ;;  %v2407_v57 = vld [vmem:[%s3485_s2 + $0x138] sm:$0xff]  ;;  %v2398_v61 = vld [vmem:[%s3485_s2 + $0xf0] sm:$0xff] }
   0xa   :  { %2410 = vmatpush.bf16.msra.mxu2 %v2373_v4  ;;  %999 = vmatpush.bf16.msra.mxu0 %v2373_v4  ;;  %v93_v27 = vpack.c.bf16 %v1936_v17, %v1936_v17  ;;  %v94_v28 = vpack.c.bf16 %v1937_v18, %v1937_v18  ;;  %v157_v29 = vpack.c.bf16 %v1952_v21, %v1952_v21  ;;  %vm47_vm8 = vcmp.eq.s32.totalorder %v2592_v39, 0  ;;  %v2335_v58 = vld [vmem:[%s3487_s1 + $0x38] sm:$0xff]  ;;  %v2334_v17 = vld [vmem:[%s3487_s1 + $0x30] sm:$0xff]  ;;  %v2690_v18 = vld [vmem:[%s3486_s0 + $0x8] sm:$0xff] }
   0xb   :  { %2418 = vmatpush.bf16.msra.mxu3 %v2381_v5  ;;  %1048 = vmatpush.bf16.msra.mxu1 %v2381_v5  ;;  %v158_v30 = vpack.c.bf16 %v1953_v22, %v1953_v22  ;;  %v85_v31 = vpack.c.bf16 %v1928_v23, %v1928_v23  ;;  %v86_v32 = vpack.c.bf16 %v1929_v24, %v1929_v24  ;;  %vm48_vm9 = vcmp.eq.s32.totalorder %v2594_v40, 0  ;;  %v2639_v59 = vld [vmem:[%s3486_s0 + $0x18] sm:$0xff]  ;;  %v2397_v23 = vld [vmem:[%s3485_s2 + $0xe8] sm:$0xff] }
   0xc   :  { %v149_v35 = vpack.c.bf16 %v1944_v25, %v1944_v25  ;;  %v150_v36 = vpack.c.bf16 %v1945_v26, %v1945_v26  ;;  %v381_v37 = vunpack.c.l.b16 %v93_v27  ;;  %v382_v38 = vunpack.c.l.b16 %v94_v28 }
   0xd   :  { %v429_v41 = vunpack.c.l.b16 %v157_v29  ;;  %v430_v42 = vunpack.c.l.b16 %v158_v30  ;;  %v373_v43 = vunpack.c.l.b16 %v85_v31  ;;  %v374_v44 = vunpack.c.l.b16 %v86_v32  ;;  %v2405_v30 = vld [vmem:[%s3485_s2 + $0x128] sm:$0xff] }
   0xe   :  { %2411 = vmatpush.bf16.msra.mxu2 %v2372_v8  ;;  %1000 = vmatpush.bf16.msra.mxu0 %v2372_v8  ;;  %v421_v47 = vunpack.c.l.b16 %v149_v35  ;;  %v422_v48 = vunpack.c.l.b16 %v150_v36  ;;  %v2608_v51 = vpack.c.b16 %v382_v38, %v381_v37  ;;  %vm111_vm10 = vcmp.eq.s32.totalorder %v2592_v39, 1  ;;  %v2333_v31 = vld [vmem:[%s3487_s1 + $0x28] sm:$0xff]  ;;  %v2388_v36 = vld [vmem:[%s3485_s2 + $0xa0] sm:$0xff] }
   0xf   :  { %2419 = vmatpush.bf16.msra.mxu3 %v2380_v9  ;;  %1049 = vmatpush.bf16.msra.mxu1 %v2380_v9  ;;  %v2617_v54 = vpack.c.b16 %v430_v42, %v429_v41  ;;  %v2619_v55 = vpack.c.b16 %v374_v44, %v373_v43  ;;  %vm112_vm11 = vcmp.eq.s32.totalorder %v2594_v40, 1  ;;  %vm39_vm12 = vcmp.eq.s32.totalorder %v2603_v49, 0  ;;  %v2396_v37 = vld [vmem:[%s3485_s2 + $0xe0] sm:$0xff] }
  0x10   :  { %v2623_v56 = vpack.c.b16 %v422_v48, %v421_v47  ;;  %vm40_vm13 = vcmp.eq.s32.totalorder %v2606_v50, 0  ;;  %vm103_vm14 = vcmp.eq.s32.totalorder %v2603_v49, 1  ;;  %vm104_vm15 = vcmp.eq.s32.totalorder %v2606_v50, 1  ;;  %v2404_v47 = vld [vmem:[%s3485_s2 + $0x120] sm:$0xff] }
  0x11   :  { %v1938_v62 = vsel %vm47_vm8, 1.0, %v2490_v16  ;;  %v1939_v63 = vsel %vm48_vm9, 1.0, %v2490_v16  ;;  %v1954_v0 = vsel %vm111_vm10, 1.0, %v2490_v16  ;;  %v1955_v1 = vsel %vm112_vm11, 1.0, %v2490_v16  ;;  %v2332_v48 = vld [vmem:[%s3487_s1 + $0x20] sm:$0xff] }
  0x12   :  { %2412 = vmatpush.bf16.msra.mxu2 %v2371_v14  ;;  %1001 = vmatpush.bf16.msra.mxu0 %v2371_v14  ;;  %v1930_v2 = vsel %vm39_vm12, 1.0, %v2490_v16  ;;  %v1931_v3 = vsel %vm40_vm13, 1.0, %v2490_v16  ;;  %v1946_v4 = vsel %vm103_vm14, 1.0, %v2490_v16  ;;  %v1947_v5 = vsel %vm104_vm15, 1.0, %v2490_v16 }
  0x13   :  { %2420 = vmatpush.bf16.msra.mxu3 %v2379_v15  ;;  %1050 = vmatpush.bf16.msra.mxu1 %v2379_v15  ;;  %v2676_v6 = vunpack.c.0.s8 %v2639_v59  ;;  %v2679_v7 = vunpack.c.1.s8 %v2639_v59  ;;  %v95_v8 = vpack.c.bf16 %v1938_v62, %v1938_v62  ;;  %v96_v9 = vpack.c.bf16 %v1939_v63, %v1939_v63  ;;  %v2406_v15 = vld [vmem:[%s3485_s2 + $0x130] sm:$0xff] }
  0x14   :  { %v159_v14 = vpack.c.bf16 %v1954_v0, %v1954_v0  ;;  %v87_v21 = vpack.c.bf16 %v1930_v2, %v1930_v2  ;;  %v88_v22 = vpack.c.bf16 %v1931_v3, %v1931_v3  ;;  %v151_v24 = vpack.c.bf16 %v1946_v4, %v1946_v4  ;;  %v2403_v4 = vld [vmem:[%s3485_s2 + $0x118] sm:$0xff] }
  0x15   :  { %v152_v25 = vpack.c.bf16 %v1947_v5, %v1947_v5  ;;  %vm49_vm0 = vcmp.eq.s32.totalorder %v2676_v6, 0  ;;  %vm50_vm1 = vcmp.eq.s32.totalorder %v2679_v7, 0  ;;  %v2701_v26 = vunpack.c.0.s8 %v2690_v18  ;;  %v2331_v5 = vld [vmem:[%s3487_s1 + $0x18] sm:$0xff] }
  0x16   :  { %2413 = vmatpush.bf16.msra.mxu2 %v2370_v19  ;;  %1002 = vmatpush.bf16.msra.mxu0 %v2370_v19  ;;  %v160_v19 = vpack.c.bf16 %v1955_v1, %v1955_v1  ;;  %v2704_v27 = vunpack.c.1.s8 %v2690_v18  ;;  %v383_v28 = vunpack.c.l.b16 %v95_v8  ;;  %v384_v29 = vunpack.c.l.b16 %v96_v9 }
  0x17   :  { %2421 = vmatpush.bf16.msra.mxu3 %v2378_v20  ;;  %1051 = vmatpush.bf16.msra.mxu1 %v2378_v20  ;;  %v2389_v20 = vld [vmem:[%s3485_s2 + $0xa8] sm:$0xff]  ;;  %vm113_vm2 = vcmp.eq.s32.totalorder %v2676_v6, 1  ;;  %vm114_vm3 = vcmp.eq.s32.totalorder %v2679_v7, 1  ;;  %v431_v32 = vunpack.c.l.b16 %v159_v14  ;;  %v376_v35 = vunpack.c.l.b16 %v88_v22  ;;  %v2386_v14 = vld [vmem:[%s3485_s2 + $0x90] sm:$0xff] }
  0x18   :  { %v423_v38 = vunpack.c.l.b16 %v151_v24  ;;  %v424_v41 = vunpack.c.l.b16 %v152_v25  ;;  %v1940_v42 = vsel %vm49_vm0, 1.0, %v2490_v16  ;;  %v1941_v43 = vsel %vm50_vm1, 1.0, %v2490_v16 }
  0x19   :  { %v1956_v44 = vsel %vm113_vm2, 1.0, %v2490_v16  ;;  %vm41_vm4 = vcmp.eq.s32.totalorder %v2701_v26, 0  ;;  %vm42_vm5 = vcmp.eq.s32.totalorder %v2704_v27, 0  ;;  %vm105_vm6 = vcmp.eq.s32.totalorder %v2701_v26, 1 }
  0x1a   :  { %2414 = vmatpush.bf16.msra.mxu2 %v2369_v33  ;;  %1003 = vmatpush.bf16.msra.mxu0 %v2369_v33  ;;  %v432_v33 = vunpack.c.l.b16 %v160_v19  ;;  %v1932_v63 = vsel %vm41_vm4, 1.0, %v2490_v16  ;;  %v1933_v0 = vsel %vm42_vm5, 1.0, %v2490_v16  ;;  %v2755_v2 = vpack.c.b16 %v424_v41, %v423_v38 }
  0x1b   :  { %2422 = vmatpush.bf16.msra.mxu3 %v2377_v34  ;;  %1052 = vmatpush.bf16.msra.mxu1 %v2377_v34  ;;  %v375_v34 = vunpack.c.l.b16 %v87_v21  ;;  %vm106_vm7 = vcmp.eq.s32.totalorder %v2704_v27, 1  ;;  %v1948_v3 = vsel %vm105_vm6, 1.0, %v2490_v16  ;;  %v89_v8 = vpack.c.bf16 %v1932_v63, %v1932_v63 }
  0x1c   :  { %v90_v9 = vpack.c.bf16 %v1933_v0, %v1933_v0  ;;  %v1949_v22 = vsel %vm106_vm7, 1.0, %v2490_v16  ;;  %vm165_vm8 = vcmp.eq.s32.totalorder %v2553_v12, 2  ;;  %vm166_vm9 = vcmp.eq.s32.totalorder %v2556_v13, 2 }
  0x1d   :  { %v2753_v1 = vpack.c.b16 %v376_v35, %v375_v34  ;;  %v2781_v24 = vunpack.c.2.s8 %v2639_v59  ;;  %v2784_v25 = vunpack.c.3.s8 %v2639_v59  ;;  %v2385_v59 = vld [vmem:[%s3485_s2 + $0x88] sm:$0xff]  ;;  %vm229_vm13 = vcmp.eq.s32.totalorder %v2553_v12, 3 }
  0x1e   :  { %2415 = vmatpush.bf16.msra.mxu2 %v2368_v45  ;;  %1004 = vmatpush.bf16.msra.mxu0 %v2368_v45  ;;  %v1957_v45 = vsel %vm114_vm3, 1.0, %v2490_v16  ;;  %v2393_v34 = vld [vmem:[%s3485_s2 + $0xc8] sm:$0xff]  ;;  %vm230_vm14 = vcmp.eq.s32.totalorder %v2556_v13, 3  ;;  %v1976_v63 = vsel %vm229_vm13, 1.0, %v2490_v16  ;;  %vm293_vm15 = vcmp.eq.s32.totalorder %v2553_v12, 4 }
  0x1f   :  { %2423 = vmatpush.bf16.msra.mxu3 %v2376_v46  ;;  %1053 = vmatpush.bf16.msra.mxu1 %v2376_v46  ;;  %v2730_v46 = vpack.c.b16 %v384_v29, %v383_v28  ;;  %v162_v62 = vpack.c.bf16 %v1957_v45, %v1957_v45  ;;  %v2402_v28 = vld [vmem:[%s3485_s2 + $0x110] sm:$0xff]  ;;  %v2401_v45 = vld [vmem:[%s3485_s2 + $0x108] sm:$0xff]  ;;  %vm51_vm10 = vcmp.eq.s32.totalorder %v2781_v24, 0  ;;  %vm52_vm11 = vcmp.eq.s32.totalorder %v2784_v25, 0 }
  0x20   :  { %v2330_v29 = vld [vmem:[%s3487_s1 + $0x10] sm:$0xff]  ;;  %vm115_vm12 = vcmp.eq.s32.totalorder %v2781_v24, 1  ;;  %v1977_v0 = vsel %vm230_vm14, 1.0, %v2490_v16  ;;  %vm294_vm0 = vcmp.eq.s32.totalorder %v2556_v13, 4  ;;  %vm116_vm1 = vcmp.eq.s32.totalorder %v2784_v25, 1 }
  0x21   :  { %1025 = vmatmul.bf16.vlgmr.msra.gmra.mxu2 %v2608_v51  ;;  %1005 = vmatmul.bf16.vlgmr.msra.gmra.mxu0 %v2619_v55  ;;  %v434_v21 = vunpack.c.l.b16 %v162_v62  ;;  %v2829_v62 = vunpack.c.3.s8 %v2690_v18  ;;  %v1958_v13 = vsel %vm115_vm12, 1.0, %v2490_v16  ;;  %vm167_vm6 = vcmp.eq.s32.totalorder %v2603_v49, 2 }
  0x22   :  { %1095 = vmatpush.bf16.msrb.mxu2 %v2391_v52  ;;  %1074 = vmatmul.bf16.vlgmr.msra.gmra.mxu3 %v2617_v54  ;;  %v2738_v52 = vpack.c.b16 %v432_v33, %v431_v32  ;;  %v377_v32 = vunpack.c.l.b16 %v89_v8  ;;  %v378_v33 = vunpack.c.l.b16 %v90_v9  ;;  %v1943_v8 = vsel %vm52_vm11, 1.0, %v2490_v16 }
  0x23   :  { %1144 = vmatpush.bf16.msrb.mxu3 %v2399_v53  ;;  %1054 = vmatmul.bf16.vlgmr.msra.gmra.mxu1 %v2623_v56  ;;  %v97_v53 = vpack.c.bf16 %v1940_v42, %v1940_v42  ;;  %v1992_v9 = vsel %vm293_vm15, 1.0, %v2490_v16  ;;  %vm44_vm3 = vcmp.eq.s32.totalorder %v2829_v62, 0  ;;  %vm108_vm5 = vcmp.eq.s32.totalorder %v2829_v62, 1 }
  0x24   :  { %1193 = vmatpush.bf16.msrb.mxu0 %v2407_v57  ;;  %1482 = vmatpush.bf16.msrb.mxu1 %v2335_v58  ;;  %v98_v57 = vpack.c.bf16 %v1941_v43, %v1941_v43  ;;  %v2387_v58 = vld [vmem:[%s3485_s2 + $0x98] sm:$0xff]  ;;  %vm168_vm7 = vcmp.eq.s32.totalorder %v2606_v50, 2  ;;  %vm296_vm11 = vcmp.eq.s32.totalorder %v2606_v50, 4  ;;  %vm169_vm12 = vcmp.eq.s32.totalorder %v2701_v26, 2 }
  0x25   :  { %vm170_vm13 = vcmp.eq.s32.totalorder %v2704_v27, 2  ;;  %vm233_vm14 = vcmp.eq.s32.totalorder %v2701_v26, 3  ;;  %vm234_vm15 = vcmp.eq.s32.totalorder %v2704_v27, 3 }
  0x26   :  { %1096 = vmatpush.bf16.msrb.mxu2 %v2390_v60  ;;  %v2395_v60 = vld [vmem:[%s3485_s2 + $0xd8] sm:$0xff]  ;;  %v386_v19 = vunpack.c.l.b16 %v98_v57  ;;  %v2392_v57 = vld [vmem:[%s3485_s2 + $0xc0] sm:$0xff] }
  0x27   :  { %1145 = vmatpush.bf16.msrb.mxu3 %v2398_v61  ;;  %v161_v61 = vpack.c.bf16 %v1956_v44, %v1956_v44 }
  0x28   :  { %1194 = vmatpush.bf16.msrb.mxu0 %v2406_v15  ;;  %1483 = vmatpush.bf16.msrb.mxu1 %v2334_v17  ;;  %v2394_v15 = vld [vmem:[%s3485_s2 + $0xd0] sm:$0xff]  ;;  %v385_v17 = vunpack.c.l.b16 %v97_v53  ;;  %v2384_v53 = vld [vmem:[%s3485_s2 + $0x80] sm:$0xff] }
  0x2a   :  { %1097 = vmatpush.bf16.msrb.mxu2 %v2389_v20  ;;  %v433_v20 = vunpack.c.l.b16 %v161_v61  ;;  %v2800_v42 = vpack.c.b16 %v386_v19, %v385_v17  ;;  %v2826_v61 = vunpack.c.2.s8 %v2690_v18  ;;  %v1942_v18 = vsel %vm51_vm10, 1.0, %v2490_v16 }
  0x2b   :  { %1146 = vmatpush.bf16.msrb.mxu3 %v2397_v23  ;;  %v153_v23 = vpack.c.bf16 %v1948_v3, %v1948_v3  ;;  %v2400_v3 = vld [vmem:[%s3485_s2 + $0x100] sm:$0xff]  ;;  %v341_v19 = vpack.c.bf16 %v1992_v9, %v1992_v9  ;;  %vm295_vm10 = vcmp.eq.s32.totalorder %v2603_v49, 4 }
  0x2c   :  { %1195 = vmatpush.bf16.msrb.mxu0 %v2405_v30  ;;  %1484 = vmatpush.bf16.msrb.mxu1 %v2333_v31  ;;  %v1960_v30 = vsel %vm165_vm8, 1.0, %v2490_v16  ;;  %v1961_v31 = vsel %vm166_vm9, 1.0, %v2490_v16  ;;  %v2802_v43 = vpack.c.b16 %v434_v21, %v433_v20  ;;  %vm43_vm2 = vcmp.eq.s32.totalorder %v2826_v61, 0 }
  0x2d   :  { %v213_v35 = vpack.c.bf16 %v1960_v30, %v1960_v30  ;;  %v425_v44 = vunpack.c.l.b16 %v153_v23  ;;  %vm107_vm4 = vcmp.eq.s32.totalorder %v2826_v61, 1  ;;  %v100_v30 = vpack.c.bf16 %v1943_v8, %v1943_v8 }
  0x2e   :  { %1098 = vmatpush.bf16.msrb.mxu2 %v2388_v36  ;;  %v214_v36 = vpack.c.bf16 %v1961_v31, %v1961_v31  ;;  %v1959_v31 = vsel %vm116_vm1, 1.0, %v2490_v16  ;;  %vm231_vm8 = vcmp.eq.s32.totalorder %v2603_v49, 3  ;;  %vm232_vm9 = vcmp.eq.s32.totalorder %v2606_v50, 3 }
  0x2f   :  { %1147 = vmatpush.bf16.msrb.mxu3 %v2396_v37  ;;  %v154_v37 = vpack.c.bf16 %v1949_v22, %v1949_v22  ;;  %v469_v38 = vunpack.c.l.b16 %v213_v35  ;;  %v565_v22 = vunpack.c.l.b16 %v341_v19  ;;  %v1935_v35 = vsel %vm44_vm3, 1.0, %v2490_v16 }
  0x30   :  { %1196 = vmatpush.bf16.msrb.mxu0 %v2404_v47  ;;  %1485 = vmatpush.bf16.msrb.mxu1 %v2332_v48  ;;  %v470_v41 = vunpack.c.l.b16 %v214_v36  ;;  %v2329_v47 = vld [vmem:[%s3487_s1 + $0x8] sm:$0xff]  ;;  %v2810_v48 = vpack.c.b16 %v378_v33, %v377_v32  ;;  %v1934_v32 = vsel %vm43_vm2, 1.0, %v2490_v16  ;;  %v2343_v33 = vld [vmem:[%s3487_s1 + $0x78] sm:$0xff]  ;;  %v388_v9 = vunpack.c.l.b16 %v100_v30 }
  0x31   :  { %1030 = vmatmul.bf16.gmra.mxu2 %v2730_v46  ;;  %1010 = vmatmul.bf16.gmra.mxu0 %v2753_v1  ;;  %v2351_v36 = vld [vmem:[%s3487_s1 + $0xb8] sm:$0xff]  ;;  %vm298_vm1 = vcmp.eq.s32.totalorder %v2704_v27, 4  ;;  %vm171_vm2 = vcmp.eq.s32.totalorder %v2826_v61, 2  ;;  %vm172_vm3 = vcmp.eq.s32.totalorder %v2829_v62, 2 }
  0x32   :  { %1099 = vmatpush.bf16.msrb.mxu2 %v2387_v58  ;;  %1079 = vmatmul.bf16.gmra.mxu3 %v2738_v52  ;;  %v2820_v58 = vpack.c.b16 %v470_v41, %v469_v38  ;;  %v2367_v38 = vld [vmem:[%s3487_s1 + $0x138] sm:$0xff]  ;;  %v1950_v41 = vsel %vm107_vm4, 1.0, %v2490_v16  ;;  %vm235_vm4 = vcmp.eq.s32.totalorder %v2826_v61, 3 }
  0x33   :  { %1148 = vmatpush.bf16.msrb.mxu3 %v2395_v60  ;;  %1059 = vmatmul.bf16.gmra.mxu1 %v2755_v2  ;;  %v426_v60 = vunpack.c.l.b16 %v154_v37  ;;  %v2359_v37 = vld [vmem:[%s3487_s1 + $0xf8] sm:$0xff] }
  0x34   :  { %1197 = vmatpush.bf16.msrb.mxu0 %v2403_v4  ;;  %1486 = vmatpush.bf16.msrb.mxu1 %v2331_v5  ;;  %v277_v4 = vpack.c.bf16 %v1976_v63, %v1976_v63  ;;  %v278_v5 = vpack.c.bf16 %v1977_v0, %v1977_v0  ;;  %v91_v63 = vpack.c.bf16 %v1934_v32, %v1934_v32 }
  0x35   :  { %v2846_v20 = vpack.c.b16 %v426_v60, %v425_v44  ;;  %v1951_v44 = vsel %vm108_vm5, 1.0, %v2490_v16  ;;  %v92_v0 = vpack.c.bf16 %v1935_v35, %v1935_v35  ;;  %vm236_vm5 = vcmp.eq.s32.totalorder %v2829_v62, 3 }
  0x36   :  { %1100 = vmatpush.bf16.msrb.mxu2 %v2386_v14  ;;  %v1993_v14 = vsel %vm294_vm0, 1.0, %v2490_v16  ;;  %v518_v17 = vunpack.c.l.b16 %v278_v5  ;;  %v379_v19 = vunpack.c.l.b16 %v91_v63  ;;  %v2366_v63 = vld [vmem:[%s3487_s1 + $0x130] sm:$0xff]  ;;  %vm297_vm0 = vcmp.eq.s32.totalorder %v2701_v26, 4  ;;  %v2341_v26 = vld [vmem:[%s3487_s1 + $0x68] sm:$0xff] }
  0x37   :  { %1149 = vmatpush.bf16.msrb.mxu3 %v2394_v15  ;;  %v517_v15 = vunpack.c.l.b16 %v277_v4  ;;  %v342_v12 = vpack.c.bf16 %v1993_v14, %v1993_v14  ;;  %v156_v4 = vpack.c.bf16 %v1951_v44, %v1951_v44 }
  0x38   :  { %1198 = vmatpush.bf16.msrb.mxu0 %v2402_v28  ;;  %1487 = vmatpush.bf16.msrb.mxu1 %v2330_v29  ;;  %v99_v28 = vpack.c.bf16 %v1942_v18, %v1942_v18  ;;  %v2328_v29 = vld [vmem:[%s3487_s1] sm:$0xff] }
  0x39   :  { %v2854_v21 = vpack.c.b16 %v518_v17, %v517_v15  ;;  %v566_v23 = vunpack.c.l.b16 %v342_v12  ;;  %v380_v12 = vunpack.c.l.b16 %v92_v0  ;;  %v1964_v0 = vsel %vm169_vm12, 1.0, %v2490_v16 }
  0x3a   :  { %1101 = vmatpush.bf16.msrb.mxu2 %v2385_v59  ;;  %v387_v8 = vunpack.c.l.b16 %v99_v28  ;;  %vm301_vm12 = vcmp.eq.s32.totalorder %v2548_v10, 4 }
  0x3b   :  { %1150 = vmatpush.bf16.msrb.mxu3 %v2393_v34  ;;  %v2868_v59 = vpack.c.b16 %v566_v23, %v565_v22  ;;  %v163_v34 = vpack.c.bf16 %v1958_v13, %v1958_v13  ;;  %v428_v22 = vunpack.c.l.b16 %v156_v4  ;;  %v1978_v23 = vsel %vm231_vm8, 1.0, %v2490_v16 }
  0x3c   :  { %1199 = vmatpush.bf16.msrb.mxu0 %v2401_v45  ;;  %1488 = vmatpush.bf16.msrb.mxu1 %v2329_v47  ;;  %v1962_v45 = vsel %vm167_vm6, 1.0, %v2490_v16  ;;  %v1963_v47 = vsel %vm168_vm7, 1.0, %v2490_v16  ;;  %v2902_v28 = vpack.c.b16 %v388_v9, %v387_v8  ;;  %v217_v4 = vpack.c.bf16 %v1964_v0, %v1964_v0 }
  0x3d   :  { %v216_v60 = vpack.c.bf16 %v1963_v47, %v1963_v47  ;;  %v435_v14 = vunpack.c.l.b16 %v163_v34  ;;  %v1995_v34 = vsel %vm296_vm11, 1.0, %v2490_v16  ;;  %v2342_v47 = vld [vmem:[%s3487_s1 + $0x70] sm:$0xff]  ;;  %v1982_v0 = vsel %vm235_vm4, 1.0, %v2490_v16 }
  0x3e   :  { %1102 = vmatpush.bf16.msrb.mxu2 %v2384_v53  ;;  %v164_v53 = vpack.c.bf16 %v1959_v31, %v1959_v31  ;;  %v279_v31 = vpack.c.bf16 %v1978_v23, %v1978_v23  ;;  %vm299_vm6 = vcmp.eq.s32.totalorder %v2826_v61, 4  ;;  %vm300_vm7 = vcmp.eq.s32.totalorder %v2829_v62, 4  ;;  %v2340_v61 = vld [vmem:[%s3487_s1 + $0x60] sm:$0xff] }
  0x3f   :  { %1151 = vmatpush.bf16.msrb.mxu3 %v2392_v57  ;;  %v215_v57 = vpack.c.bf16 %v1962_v45, %v1962_v45  ;;  %v472_v18 = vunpack.c.l.b16 %v216_v60  ;;  %v2358_v60 = vld [vmem:[%s3487_s1 + $0xf0] sm:$0xff]  ;;  %vm173_vm8 = vcmp.eq.s32.totalorder %v2548_v10, 2  ;;  %vm238_vm11 = vcmp.eq.s32.totalorder %v2550_v11, 3 }
  0x40   :  { %1200 = vmatpush.bf16.msrb.mxu0 %v2400_v3  ;;  %1489 = vmatpush.bf16.msrb.mxu1 %v2328_v29  ;;  %v155_v3 = vpack.c.bf16 %v1950_v41, %v1950_v41  ;;  %v436_v15 = vunpack.c.l.b16 %v164_v53  ;;  %v1979_v29 = vsel %vm232_vm9, 1.0, %v2490_v16  ;;  %v519_v35 = vunpack.c.l.b16 %v279_v31 }
  0x41   :  { %1035 = vmatmul.bf16.gmra.mxu2 %v2800_v42  ;;  %1015 = vmatmul.bf16.gmra.mxu0 %v2810_v48  ;;  %v471_v5 = vunpack.c.l.b16 %v215_v57  ;;  %v280_v32 = vpack.c.bf16 %v1979_v29, %v1979_v29  ;;  %v2908_v41 = vpack.c.b16 %v380_v12, %v379_v19  ;;  %v2350_v57 = vld [vmem:[%s3487_s1 + $0xb0] sm:$0xff]  ;;  %vm174_vm9 = vcmp.eq.s32.totalorder %v2550_v11, 2 }
  0x42   :  { %1084 = vmatmul.bf16.gmra.mxu3 %v2802_v43  ;;  %1531 = vmatpush.bf16.msra.mxu2 %v2343_v33  ;;  %v427_v13 = vunpack.c.l.b16 %v155_v3  ;;  %v2904_v30 = vpack.c.b16 %v436_v15, %v435_v14  ;;  %v1994_v33 = vsel %vm295_vm10, 1.0, %v2490_v16  ;;  %v1965_v3 = vsel %vm170_vm13, 1.0, %v2490_v16 }
  0x43   :  { %1064 = vmatmul.bf16.gmra.mxu1 %v2846_v20  ;;  %1580 = vmatpush.bf16.msra.mxu3 %v2351_v36  ;;  %v2894_v17 = vpack.c.b16 %v472_v18, %v471_v5  ;;  %v520_v36 = vunpack.c.l.b16 %v280_v32  ;;  %v218_v5 = vpack.c.bf16 %v1965_v3, %v1965_v3  ;;  %v473_v18 = vunpack.c.l.b16 %v217_v4 }
  0x44   :  { %1629 = vmatpush.bf16.msra.mxu0 %v2359_v37  ;;  %1678 = vmatpush.bf16.msra.mxu1 %v2367_v38  ;;  %3491 = vst [vmem:[#allocation2_spill] sm:$0xff] %v2904_v30  ;;  %v343_v37 = vpack.c.bf16 %v1994_v33, %v1994_v33  ;;  %v344_v38 = vpack.c.bf16 %v1995_v34, %v1995_v34  ;;  %v1980_v14 = vsel %vm233_vm14, 1.0, %v2490_v16  ;;  %v1981_v15 = vsel %vm234_vm15, 1.0, %v2490_v16 }
  0x45   :  { %v2910_v44 = vpack.c.b16 %v428_v22, %v427_v13  ;;  %v2912_v45 = vpack.c.b16 %v520_v36, %v519_v35  ;;  %v474_v8 = vunpack.c.l.b16 %v218_v5  ;;  %v281_v19 = vpack.c.bf16 %v1980_v14, %v1980_v14  ;;  %v2349_v36 = vld [vmem:[%s3487_s1 + $0xa8] sm:$0xff] }
  0x46   :  { %v567_v49 = vunpack.c.l.b16 %v343_v37  ;;  %v568_v50 = vunpack.c.l.b16 %v344_v38  ;;  %1532 = vmatpush.bf16.msra.mxu2 %v2342_v47  ;;  %v282_v12 = vpack.c.bf16 %v1981_v15, %v1981_v15  ;;  %v1996_v13 = vsel %vm297_vm0, 1.0, %v2490_v16  ;;  %v2357_v37 = vld [vmem:[%s3487_s1 + $0xe8] sm:$0xff] }
  0x47   :  { %1581 = vmatpush.bf16.msra.mxu3 %v2350_v57  ;;  %v2936_v9 = vpack.c.b16 %v474_v8, %v473_v18  ;;  %v1997_v22 = vsel %vm298_vm1, 1.0, %v2490_v16  ;;  %v521_v23 = vunpack.c.l.b16 %v281_v19  ;;  %v345_v31 = vpack.c.bf16 %v1996_v13, %v1996_v13  ;;  %v2365_v38 = vld [vmem:[%s3487_s1 + $0x128] sm:$0xff] }
  0x48   :  { %v2919_v53 = vpack.c.b16 %v568_v50, %v567_v49  ;;  %1630 = vmatpush.bf16.msra.mxu0 %v2358_v60  ;;  %1679 = vmatpush.bf16.msra.mxu1 %v2366_v63  ;;  %v522_v29 = vunpack.c.l.b16 %v282_v12  ;;  %v346_v32 = vpack.c.bf16 %v1997_v22, %v1997_v22  ;;  %v1966_v49 = vsel %vm171_vm2, 1.0, %v2490_v16 }
  0x49   :  { %v569_v34 = vunpack.c.l.b16 %v345_v31  ;;  %v219_v50 = vpack.c.bf16 %v1966_v49, %v1966_v49  ;;  %v1983_v3 = vsel %vm236_vm5, 1.0, %v2490_v16  ;;  %v283_v4 = vpack.c.bf16 %v1982_v0, %v1982_v0  ;;  %v2356_v31 = vld [vmem:[%s3487_s1 + $0xe0] sm:$0xff] }
  0x4a   :  { %v2946_v33 = vpack.c.b16 %v522_v29, %v521_v23  ;;  %v570_v35 = vunpack.c.l.b16 %v346_v32  ;;  %1533 = vmatpush.bf16.msra.mxu2 %v2341_v26  ;;  %v284_v5 = vpack.c.bf16 %v1983_v3, %v1983_v3  ;;  %v1998_v18 = vsel %vm299_vm6, 1.0, %v2490_v16  ;;  %v2348_v29 = vld [vmem:[%s3487_s1 + $0xa0] sm:$0xff]  ;;  %v2363_v26 = vld [vmem:[%s3487_s1 + $0x118] sm:$0xff]  ;;  %v2354_v3 = vld [vmem:[%s3487_s1 + $0xd0] sm:$0xff] }
  0x4b   :  { %1582 = vmatpush.bf16.msra.mxu3 %v2349_v36  ;;  %v475_v57 = vunpack.c.l.b16 %v219_v50  ;;  %v1999_v8 = vsel %vm300_vm7, 1.0, %v2490_v16  ;;  %v523_v14 = vunpack.c.l.b16 %v283_v4  ;;  %v347_v19 = vpack.c.bf16 %v1998_v18, %v1998_v18  ;;  %v2364_v32 = vld [vmem:[%s3487_s1 + $0x120] sm:$0xff] }
  0x4c   :  { %v2953_v27 = vpack.c.b16 %v570_v35, %v569_v34  ;;  %1631 = vmatpush.bf16.msra.mxu0 %v2357_v37  ;;  %1680 = vmatpush.bf16.msra.mxu1 %v2365_v38  ;;  %v524_v15 = vunpack.c.l.b16 %v284_v5  ;;  %v348_v12 = vpack.c.bf16 %v1999_v8, %v1999_v8  ;;  %v2347_v34 = vld [vmem:[%s3487_s1 + $0x98] sm:$0xff]  ;;  %vm237_vm10 = vcmp.eq.s32.totalorder %v2548_v10, 3  ;;  %v2346_v38 = vld [vmem:[%s3487_s1 + $0x90] sm:$0xff] }
  0x4d   :  { %v571_v22 = vunpack.c.l.b16 %v347_v19  ;;  %v2355_v35 = vld [vmem:[%s3487_s1 + $0xd8] sm:$0xff]  ;;  %vm302_vm13 = vcmp.eq.s32.totalorder %v2550_v11, 4  ;;  %v1968_v36 = vsel %vm173_vm8, 1.0, %v2490_v16  ;;  %v1969_v37 = vsel %vm174_vm9, 1.0, %v2490_v16 }
  0x4e   :  { %v2980_v13 = vpack.c.b16 %v524_v15, %v523_v14  ;;  %v572_v23 = vunpack.c.l.b16 %v348_v12  ;;  %1534 = vmatpush.bf16.msra.mxu2 %v2340_v61  ;;  %v1984_v10 = vsel %vm237_vm10, 1.0, %v2490_v16  ;;  %v1985_v11 = vsel %vm238_vm11, 1.0, %v2490_v16 }
  0x4f   :  { %1583 = vmatpush.bf16.msra.mxu3 %v2348_v29  ;;  %v2000_v49 = vsel %vm301_vm12, 1.0, %v2490_v16  ;;  %v221_v50 = vpack.c.bf16 %v1968_v36, %v1968_v36  ;;  %vm175_vm14 = vcmp.eq.s32.totalorder %v2592_v39, 2  ;;  %vm176_vm15 = vcmp.eq.s32.totalorder %v2594_v40, 2 }
  0x50   :  { %v2987_v62 = vpack.c.b16 %v572_v23, %v571_v22  ;;  %1632 = vmatpush.bf16.msra.mxu0 %v2356_v31  ;;  %1681 = vmatpush.bf16.msra.mxu1 %v2364_v32  ;;  %v2362_v22 = vld [vmem:[%s3487_s1 + $0x110] sm:$0xff]  ;;  %vm239_vm0 = vcmp.eq.s32.totalorder %v2592_v39, 3  ;;  %vm240_vm1 = vcmp.eq.s32.totalorder %v2594_v40, 3  ;;  %vm303_vm2 = vcmp.eq.s32.totalorder %v2592_v39, 4 }
  0x51   :  { %1040 = vmatmul.bf16.gmra.mxu2 %v2902_v28  ;;  %1020 = vmatmul.bf16.gmra.mxu0 %v2908_v41  ;;  %v477_v4 = vunpack.c.l.b16 %v221_v50  ;;  %v1970_v32 = vsel %vm175_vm14, 1.0, %v2490_v16  ;;  %v1986_v39 = vsel %vm239_vm0, 1.0, %v2490_v16  ;;  %vm177_vm4 = vcmp.eq.s32.totalorder %v2676_v6, 2 }
  0x52   :  { %1089 = vmatmul.bf16.gmra.mxu3 %v2904_v30  ;;  %vm178_vm5 = vcmp.eq.s32.totalorder %v2679_v7, 2  ;;  %vm241_vm6 = vcmp.eq.s32.totalorder %v2676_v6, 3  ;;  %vm242_vm7 = vcmp.eq.s32.totalorder %v2679_v7, 3  ;;  %vm305_vm8 = vcmp.eq.s32.totalorder %v2676_v6, 4 }
  0x53   :  { %1069 = vmatmul.bf16.gmra.mxu1 %v2910_v44  ;;  %1584 = vmatpush.bf16.msra.mxu3 %v2347_v34  ;;  %v1971_v34 = vsel %vm176_vm15, 1.0, %v2490_v16  ;;  %vm306_vm9 = vcmp.eq.s32.totalorder %v2679_v7, 4  ;;  %v1988_v6 = vsel %vm241_vm6, 1.0, %v2490_v16  ;;  %v1989_v7 = vsel %vm242_vm7, 1.0, %v2490_v16 }
  0x54   :  { %1633 = vmatpush.bf16.msra.mxu0 %v2355_v35  ;;  %1682 = vmatpush.bf16.msra.mxu1 %v2363_v26  ;;  %v2345_v35 = vld [vmem:[%s3487_s1 + $0x88] sm:$0xff]  ;;  %v2002_v26 = vsel %vm303_vm2, 1.0, %v2490_v16  ;;  %vm179_vm10 = vcmp.eq.s32.totalorder %v2781_v24, 2  ;;  %vm180_vm11 = vcmp.eq.s32.totalorder %v2784_v25, 2  ;;  %vm243_vm12 = vcmp.eq.s32.totalorder %v2781_v24, 3 }
  0x55   :  { %vm307_vm14 = vcmp.eq.s32.totalorder %v2781_v24, 4  ;;  %vm308_vm15 = vcmp.eq.s32.totalorder %v2784_v25, 4  ;;  %vm1907_vm0 = vcmask 7168  }
  0x56   :  { %v2006_v24 = vsel %vm307_vm14, 1.0, %v2490_v16 }
  0x57   :  { %1585 = vmatpush.bf16.msra.mxu3 %v2346_v38  ;;  %v287_v38 = vpack.c.bf16 %v1986_v39, %v1986_v39 }
  0x58   :  { %1634 = vmatpush.bf16.msra.mxu0 %v2354_v3  ;;  %1683 = vmatpush.bf16.msra.mxu1 %v2362_v22 }
  0x5b   :  { %1586 = vmatpush.bf16.msra.mxu3 %v2345_v35  ;;  %v1972_v35 = vsel %vm177_vm4, 1.0, %v2490_v16 }
  0x61   :  { %1103 = vmatmul.bf16.vlgmr.msrb.gmra.mxu2 %v2820_v58  ;;  %1201 = vmatmul.bf16.vlgmr.msrb.gmra.mxu0 %v2868_v59 }
  0x62   :  { %1152 = vmatmul.bf16.vlgmr.msrb.gmra.mxu3 %v2854_v21 }
  0x63   :  { %1490 = vmatmul.bf16.vlgmr.msrb.gmra.mxu1 %v2619_v55  ;;  %v1967_v55 = vsel %vm172_vm3, 1.0, %v2490_v16  ;;  %vm304_vm3 = vcmp.eq.s32.totalorder %v2594_v40, 4  ;;  %v1987_v40 = vsel %vm240_vm1, 1.0, %v2490_v16 }
  0x64   :  { %v220_v47 = vpack.c.bf16 %v1967_v55, %v1967_v55  ;;  %v2001_v55 = vsel %vm302_vm13, 1.0, %v2490_v16  ;;  %vm244_vm13 = vcmp.eq.s32.totalorder %v2784_v25, 3  ;;  %v2007_v25 = vsel %vm308_vm15, 1.0, %v2490_v16 }
  0x65   :  { %v350_v0 = vpack.c.bf16 %v2001_v55, %v2001_v55  ;;  %v351_v55 = vpack.c.bf16 %v2002_v26, %v2002_v26  ;;  %v2336_v26 = vld [vmem:[%s3487_s1 + $0x40] sm:$0xff] }
  0x66   :  { %v476_v60 = vunpack.c.l.b16 %v220_v47  ;;  %v285_v47 = vpack.c.bf16 %v1984_v10, %v1984_v10  ;;  %v223_v10 = vpack.c.bf16 %v1970_v32, %v1970_v32  ;;  %v2361_v32 = vld [vmem:[%s3487_s1 + $0x108] sm:$0xff] }
  0x67   :  { %v574_v15 = vunpack.c.l.b16 %v350_v0  ;;  %1684 = vmatpush.bf16.msra.mxu1 %v2361_v32 }
  0x68   :  { %v2970_v63 = vpack.c.b16 %v476_v60, %v475_v57  ;;  %v286_v57 = vpack.c.bf16 %v1985_v11, %v1985_v11  ;;  %v349_v60 = vpack.c.bf16 %v2000_v49, %v2000_v49  ;;  %v525_v18 = vunpack.c.l.b16 %v285_v47 }
  0x69   :  { %v224_v11 = vpack.c.bf16 %v1971_v34, %v1971_v34  ;;  %v288_v49 = vpack.c.bf16 %v1987_v40, %v1987_v40  ;;  %v479_v0 = vunpack.c.l.b16 %v223_v10  ;;  %v2005_v10 = vsel %vm306_vm9, 1.0, %v2490_v16 }
  0x6a   :  { %v526_v8 = vunpack.c.l.b16 %v286_v57  ;;  %v573_v14 = vunpack.c.l.b16 %v349_v60  ;;  %v2353_v60 = vld [vmem:[%s3487_s1 + $0xc8] sm:$0xff] }
  0x6b   :  { %v480_v3 = vunpack.c.l.b16 %v224_v11  ;;  %1635 = vmatpush.bf16.msra.mxu0 %v2353_v60  ;;  %v354_v60 = vpack.c.bf16 %v2005_v10, %v2005_v10 }
  0x6c   :  { %v3043_v12 = vpack.c.b16 %v526_v8, %v525_v18  ;;  %v3048_v23 = vpack.c.b16 %v574_v15, %v573_v14  ;;  %v575_v18 = vunpack.c.l.b16 %v351_v55 }
  0x71   :  { %1108 = vmatmul.bf16.gmra.mxu2 %v2894_v17  ;;  %1206 = vmatmul.bf16.gmra.mxu0 %v2919_v53 }
  0x72   :  { %1157 = vmatmul.bf16.gmra.mxu3 %v2912_v45 }
  0x73   :  { %1495 = vmatmul.bf16.gmra.mxu1 %v2753_v1  ;;  %v2339_v1 = vld [vmem:[%s3487_s1 + $0x58] sm:$0xff] }
  0x74   :  { %1535 = vmatpush.bf16.msra.mxu2 %v2339_v1  ;;  %v2337_v1 = vld [vmem:[%s3487_s1 + $0x48] sm:$0xff] }
  0x81   :  { %1113 = vmatmul.bf16.gmra.mxu2 %v2936_v9  ;;  %1211 = vmatmul.bf16.gmra.mxu0 %v2953_v27 }
  0x82   :  { %1162 = vmatmul.bf16.gmra.mxu3 %v2946_v33 }
  0x83   :  { %1500 = vmatmul.bf16.gmra.mxu1 %v2810_v48  ;;  %v2338_v48 = vld [vmem:[%s3487_s1 + $0x50] sm:$0xff] }
  0x84   :  { %1536 = vmatpush.bf16.msra.mxu2 %v2338_v48  ;;  %v2003_v48 = vsel %vm304_vm3, 1.0, %v2490_v16 }
  0x85   :  { %v352_v50 = vpack.c.bf16 %v2003_v48, %v2003_v48  ;;  %v1973_v48 = vsel %vm178_vm5, 1.0, %v2490_v16 }
  0x86   :  { %v226_v55 = vpack.c.bf16 %v1973_v48, %v1973_v48 }
  0x87   :  { %v576_v8 = vunpack.c.l.b16 %v352_v50  ;;  %v289_v50 = vpack.c.bf16 %v1988_v6, %v1988_v6 }
  0x88   :  { %1537 = vmatpush.bf16.msra.mxu2 %v2337_v1 }
  0x89   :  { %v3090_v1 = vpack.c.b16 %v576_v8, %v575_v18  ;;  %v482_v8 = vunpack.c.l.b16 %v226_v55  ;;  %v1990_v55 = vsel %vm243_vm12, 1.0, %v2490_v16 }
  0x8c   :  { %1538 = vmatpush.bf16.msra.mxu2 %v2336_v26 }
  0x91   :  { %1118 = vmatmul.bf16.gmra.mxu2 %v2970_v63  ;;  %1216 = vmatmul.bf16.gmra.mxu0 %v2987_v62 }
  0x92   :  { %1167 = vmatmul.bf16.gmra.mxu3 %v2980_v13 }
  0x93   :  { %1505 = vmatmul.bf16.gmra.mxu1 %v2908_v41  ;;  %v222_v41 = vpack.c.bf16 %v1969_v37, %v1969_v37 }
  0x95   :  { %v478_v5 = vunpack.c.l.b16 %v222_v41 }
  0x97   :  { %v3041_v19 = vpack.c.b16 %v478_v5, %v477_v4  ;;  %v527_v4 = vunpack.c.l.b16 %v287_v38  ;;  %v528_v5 = vunpack.c.l.b16 %v288_v49  ;;  %v225_v49 = vpack.c.bf16 %v1972_v35, %v1972_v35 }
  0x99   :  { %v481_v18 = vunpack.c.l.b16 %v225_v49  ;;  %v1975_v49 = vsel %vm180_vm11, 1.0, %v2490_v16 }
  0x9b   :  { %v3125_v48 = vpack.c.b16 %v482_v8, %v481_v18  ;;  %v355_v8 = vpack.c.bf16 %v2006_v24, %v2006_v24 }
  0x9e   :  { %v1006_v61 = vpop.f32.mrf.mxu0 }
  0xa0   :  { %v1055_v29 = vpop.f32.mrf.mxu1 }
  0xa1   :  { %v3054_v31 = vadd.f32 %v1055_v29, %v1006_v61  ;;  %1123 = vmatmul.bf16.gmra.mxu2 %v3041_v19  ;;  %1221 = vmatmul.bf16.gmra.mxu0 %v3048_v23  ;;  %v3083_v61 = vpack.c.b16 %v480_v3, %v479_v0  ;;  %v3085_v29 = vpack.c.b16 %v528_v5, %v527_v4  ;;  %v2352_v5 = vld [vmem:[%s3487_s1 + $0xc0] sm:$0xff] }
  0xa2   :  { %1172 = vmatmul.bf16.gmra.mxu3 %v3043_v12  ;;  %1636 = vmatpush.bf16.msra.mxu0 %v2352_v5  ;;  %v291_v5 = vpack.c.bf16 %v1990_v55, %v1990_v55 }
  0xa3   :  { %1510 = vmatmul.bf16.gmra.mxu1 %v2608_v51 }
  0xa4   :  { %v1026_v36 = vpop.f32.mrf.mxu2 }
  0xa5   :  { %v1075_v37 = vpop.f32.mrf.mxu3 }
  0xa6   :  { %v3074_v51 = vadd.f32 %v1075_v37, %v1026_v36  ;;  %v1008_v41 = vpop.f32.mrf.mxu0  ;;  %v2344_v36 = vld [vmem:[%s3487_s1 + $0x80] sm:$0xff]  ;;  %v2004_v37 = vsel %vm305_vm8, 1.0, %v2490_v16 }
  0xa7   :  { %1587 = vmatpush.bf16.msra.mxu3 %v2344_v36 }
  0xa8   :  { %v1057_v47 = vpop.f32.mrf.mxu1 }
  0xa9   :  { %v3076_v57 = vadd.f32 %v1057_v47, %v1008_v41  ;;  %v290_v41 = vpack.c.bf16 %v1989_v7, %v1989_v7  ;;  %v353_v47 = vpack.c.bf16 %v2004_v37, %v2004_v37  ;;  %v2360_v7 = vld [vmem:[%s3487_s1 + $0x100] sm:$0xff] }
  0xaa   :  { %1685 = vmatpush.bf16.msra.mxu1 %v2360_v7 }
  0xab   :  { %v577_v32 = vunpack.c.l.b16 %v353_v47 }
  0xac   :  { %v1028_v14 = vpop.f32.mrf.mxu2 }
  0xad   :  { %v1077_v15 = vpop.f32.mrf.mxu3 }
  0xae   :  { %v3081_v22 = vadd.f32 %v1077_v15, %v1028_v14  ;;  %v1011_v34 = vpop.f32.mrf.mxu0  ;;  %v529_v14 = vunpack.c.l.b16 %v289_v50  ;;  %v530_v15 = vunpack.c.l.b16 %v290_v41  ;;  %v1991_v50 = vsel %vm244_vm13, 1.0, %v2490_v16 }
  0xaf   :  { %v292_v18 = vpack.c.bf16 %v1991_v50, %v1991_v50 }
  0xb0   :  { %v1060_v39 = vpop.f32.mrf.mxu1  ;;  %v3127_v6 = vpack.c.b16 %v530_v15, %v529_v14 }
  0xb1   :  { %v3096_v40 = vadd.f32 %v1060_v39, %v1011_v34  ;;  %1128 = vmatmul.bf16.gmra.mxu2 %v3083_v61  ;;  %1226 = vmatmul.bf16.gmra.mxu0 %v3090_v1  ;;  %v578_v34 = vunpack.c.l.b16 %v354_v60  ;;  %v532_v7 = vunpack.c.l.b16 %v292_v18 }
  0xb2   :  { %1177 = vmatmul.bf16.gmra.mxu3 %v3085_v29 }
  0xb3   :  { %1515 = vmatmul.bf16.gmra.mxu1 %v2730_v46  ;;  %v3132_v36 = vpack.c.b16 %v578_v34, %v577_v32 }
  0xb4   :  { %v1031_v11 = vpop.f32.mrf.mxu2 }
  0xb5   :  { %v1080_v38 = vpop.f32.mrf.mxu3 }
  0xb6   :  { %v3116_v46 = vadd.f32 %v1080_v38, %v1031_v11  ;;  %v1013_v0 = vpop.f32.mrf.mxu0  ;;  %v1974_v38 = vsel %vm179_vm10, 1.0, %v2490_v16 }
  0xb7   :  { %v227_v60 = vpack.c.bf16 %v1974_v38, %v1974_v38 }
  0xb8   :  { %v1062_v3 = vpop.f32.mrf.mxu1 }
  0xb9   :  { %v3118_v4 = vadd.f32 %v1062_v3, %v1013_v0  ;;  %v228_v3 = vpack.c.bf16 %v1975_v49, %v1975_v49  ;;  %v483_v34 = vunpack.c.l.b16 %v227_v60 }
  0xbc   :  { %v1033_v39 = vpop.f32.mrf.mxu2 }
  0xbd   :  { %v1082_v35 = vpop.f32.mrf.mxu3 }
  0xbe   :  { %v3123_v26 = vadd.f32 %v1082_v35, %v1033_v39  ;;  %v1016_v37 = vpop.f32.mrf.mxu0  ;;  %v484_v39 = vunpack.c.l.b16 %v228_v3  ;;  %v531_v35 = vunpack.c.l.b16 %v291_v5 }
  0xc0   :  { %v1065_v10 = vpop.f32.mrf.mxu1  ;;  %v3160_v49 = vpack.c.b16 %v532_v7, %v531_v35 }
  0xc1   :  { %v3138_v11 = vadd.f32 %v1065_v10, %v1016_v37  ;;  %1133 = vmatmul.bf16.gmra.mxu2 %v3125_v48  ;;  %1231 = vmatmul.bf16.gmra.mxu0 %v3132_v36  ;;  %v579_v37 = vunpack.c.l.b16 %v355_v8 }
  0xc2   :  { %1182 = vmatmul.bf16.gmra.mxu3 %v3127_v6 }
  0xc3   :  { %1520 = vmatmul.bf16.gmra.mxu1 %v2800_v42  ;;  %v356_v42 = vpack.c.bf16 %v2007_v25, %v2007_v25 }
  0xc4   :  { %v1036_v41 = vpop.f32.mrf.mxu2 }
  0xc5   :  { %v1085_v47 = vpop.f32.mrf.mxu3  ;;  %v580_v16 = vunpack.c.l.b16 %v356_v42 }
  0xc6   :  { %v3152_v0 = vadd.f32 %v1085_v47, %v1036_v41  ;;  %v1018_v14 = vpop.f32.mrf.mxu0  ;;  %v3158_v41 = vpack.c.b16 %v484_v39, %v483_v34 }
  0xc7   :  { %v3162_v55 = vpack.c.b16 %v580_v16, %v579_v37 }
  0xc8   :  { %v1067_v15 = vpop.f32.mrf.mxu1 }
  0xc9   :  { %v3154_v32 = vadd.f32 %v1067_v15, %v1018_v14 }
  0xcc   :  { %v1038_v10 = vpop.f32.mrf.mxu2 }
  0xcd   :  { %v1087_v30 = vpop.f32.mrf.mxu3 }
  0xce   :  { %v3156_v38 = vadd.f32 %v1087_v30, %v1038_v10  ;;  %v1021_v50 = vpop.f32.mrf.mxu0 }
  0xd0   :  { %v1070_v24 = vpop.f32.mrf.mxu1 }
  0xd1   :  { %v3164_v25 = vadd.f32 %v1070_v24, %v1021_v50  ;;  %1138 = vmatmul.bf16.gmra.mxu2 %v3158_v41  ;;  %1236 = vmatmul.bf16.gmra.mxu0 %v3162_v55 }
  0xd2   :  { %1187 = vmatmul.bf16.gmra.mxu3 %v3160_v49 }
  0xd3   :  { %1525 = vmatmul.bf16.gmra.mxu1 %v2902_v28 }
  0xd4   :  { %v1041_v30 = vpop.f32.mrf.mxu2 }
  0xd5   :  { %v1090_v47 = vpop.f32.mrf.mxu3 }
  0xd6   :  { %v3170_v60 = vadd.f32 %v1090_v47, %v1041_v30  ;;  %v1023_v3 = vpop.f32.mrf.mxu0 }
  0xd8   :  { %v1072_v5 = vpop.f32.mrf.mxu1 }
  0xd9   :  { %v3172_v18 = vadd.f32 %v1072_v5, %v1023_v3 }
  0xdc   :  { %v1043_v8 = vpop.f32.mrf.mxu2 }
  0xdd   :  { %v1092_v42 = vpop.f32.mrf.mxu3 }
  0xde   :  { %v3174_v14 = vadd.f32 %v1092_v42, %v1043_v8  ;;  %v1202_v15 = vpop.f32.mrf.mxu0 }
  0xe0   :  { %v1491_v34 = vpop.f32.mrf.mxu1 }
  0xe1   :  { %1539 = vmatmul.bf16.vlgmr.msra.gmra.mxu2 %v2623_v56  ;;  %1637 = vmatmul.bf16.vlgmr.msra.gmra.mxu0 %v2854_v21 }
  0xe2   :  { %1588 = vmatmul.bf16.vlgmr.msra.gmra.mxu3 %v2820_v58 }
  0xe3   :  { %1686 = vmatmul.bf16.vlgmr.msra.gmra.mxu1 %v2868_v59 }
  0xe4   :  { %v1104_v28 = vpop.f32.mrf.mxu2 }
  0xe5   :  { %v1153_v39 = vpop.f32.mrf.mxu3  ;;  %v1105_v35 = vadd.f32 %v1104_v28, %v3054_v31 }
  0xe6   :  { %v1204_v37 = vpop.f32.mrf.mxu0 }
  0xe7   :  { %v1154_v7 = vadd.f32 %v1153_v39, %v1105_v35 }
  0xe8   :  { %v1493_v16 = vpop.f32.mrf.mxu1 }
  0xe9   :  { %v1203_v10 = vadd.f32 %v1202_v15, %v1154_v7 }
  0xeb   :  { %v3181_v50 = vadd.f32 %v1491_v34, %v1203_v10 }
  0xec   :  { %v1106_v24 = vpop.f32.mrf.mxu2 }
  0xed   :  { %v1155_v30 = vpop.f32.mrf.mxu3  ;;  %v1107_v56 = vadd.f32 %v1106_v24, %v3076_v57 }
  0xee   :  { %v1207_v58 = vpop.f32.mrf.mxu0 }
  0xef   :  { %v1156_v47 = vadd.f32 %v1155_v30, %v1107_v56 }
  0xf0   :  { %v1496_v3 = vpop.f32.mrf.mxu1 }
  0xf1   :  { %v1205_v21 = vadd.f32 %v1204_v37, %v1156_v47  ;;  %1544 = vmatmul.bf16.gmra.mxu2 %v2755_v2  ;;  %1642 = vmatmul.bf16.gmra.mxu0 %v2912_v45 }
  0xf2   :  { %1593 = vmatmul.bf16.gmra.mxu3 %v2894_v17 }
  0xf3   :  { %1691 = vmatmul.bf16.gmra.mxu1 %v2919_v53  ;;  %v3188_v59 = vadd.f32 %v1493_v16, %v1205_v21 }
  0xf4   :  { %v1109_v31 = vpop.f32.mrf.mxu2 }
  0xf5   :  { %v1158_v5 = vpop.f32.mrf.mxu3  ;;  %v1110_v8 = vadd.f32 %v1109_v31, %v3096_v40 }
  0xf6   :  { %v1209_v57 = vpop.f32.mrf.mxu0 }
  0xf7   :  { %v1159_v42 = vadd.f32 %v1158_v5, %v1110_v8 }
  0xf8   :  { %v1498_v15 = vpop.f32.mrf.mxu1 }
  0xf9   :  { %v1208_v34 = vadd.f32 %v1207_v58, %v1159_v42 }
  0xfb   :  { %v3191_v28 = vadd.f32 %v1496_v3, %v1208_v34 }
  0xfc   :  { %v1111_v39 = vpop.f32.mrf.mxu2 }
  0xfd   :  { %v1160_v2 = vpop.f32.mrf.mxu3  ;;  %v1112_v17 = vadd.f32 %v1111_v39, %v3118_v4 }
  0xfe   :  { %v1212_v45 = vpop.f32.mrf.mxu0 }
  0xff   :  { %v1161_v35 = vadd.f32 %v1160_v2, %v1112_v17 }
 0x100   :  { %v1501_v7 = vpop.f32.mrf.mxu1 }
 0x101   :  { %v1210_v53 = vadd.f32 %v1209_v57, %v1161_v35  ;;  %1549 = vmatmul.bf16.gmra.mxu2 %v2846_v20  ;;  %1647 = vmatmul.bf16.gmra.mxu0 %v2946_v33 }
 0x102   :  { %1598 = vmatmul.bf16.gmra.mxu3 %v2936_v9 }
 0x103   :  { %1696 = vmatmul.bf16.gmra.mxu1 %v2953_v27  ;;  %v3198_v40 = vadd.f32 %v1498_v15, %v1210_v53 }
 0x104   :  { %v1114_v37 = vpop.f32.mrf.mxu2 }
 0x105   :  { %v1163_v16 = vpop.f32.mrf.mxu3  ;;  %v1115_v10 = vadd.f32 %v1114_v37, %v3138_v11 }
 0x106   :  { %v1214_v4 = vpop.f32.mrf.mxu0 }
 0x107   :  { %v1164_v24 = vadd.f32 %v1163_v16, %v1115_v10 }
 0x108   :  { %v1503_v30 = vpop.f32.mrf.mxu1 }
 0x109   :  { %v1213_v56 = vadd.f32 %v1212_v45, %v1164_v24 }
 0x10b   :  { %v3201_v47 = vadd.f32 %v1501_v7, %v1213_v56 }
 0x10c   :  { %v1116_v58 = vpop.f32.mrf.mxu2 }
 0x10d   :  { %v1165_v20 = vpop.f32.mrf.mxu3  ;;  %v1117_v9 = vadd.f32 %v1116_v58, %v3154_v32 }
 0x10e   :  { %v1217_v33 = vpop.f32.mrf.mxu0 }
 0x10f   :  { %v1166_v3 = vadd.f32 %v1165_v20, %v1117_v9 }
 0x110   :  { %v1506_v21 = vpop.f32.mrf.mxu1 }
 0x111   :  { %v1215_v27 = vadd.f32 %v1214_v4, %v1166_v3  ;;  %1554 = vmatmul.bf16.gmra.mxu2 %v2910_v44  ;;  %1652 = vmatmul.bf16.gmra.mxu0 %v2980_v13 }
 0x112   :  { %1603 = vmatmul.bf16.gmra.mxu3 %v2970_v63 }
 0x113   :  { %1701 = vmatmul.bf16.gmra.mxu1 %v2987_v62  ;;  %v3208_v11 = vadd.f32 %v1503_v30, %v1215_v27 }
 0x114   :  { %v1119_v31 = vpop.f32.mrf.mxu2 }
 0x115   :  { %v1168_v5 = vpop.f32.mrf.mxu3  ;;  %v1120_v8 = vadd.f32 %v1119_v31, %v3164_v25 }
 0x116   :  { %v1219_v32 = vpop.f32.mrf.mxu0 }
 0x117   :  { %v1169_v42 = vadd.f32 %v1168_v5, %v1120_v8 }
 0x118   :  { %v1508_v57 = vpop.f32.mrf.mxu1 }
 0x119   :  { %v1218_v15 = vadd.f32 %v1217_v33, %v1169_v42 }
 0x11b   :  { %v3211_v34 = vadd.f32 %v1506_v21, %v1218_v15 }
 0x11c   :  { %v1121_v39 = vpop.f32.mrf.mxu2 }
 0x11d   :  { %v1170_v44 = vpop.f32.mrf.mxu3  ;;  %v1122_v63 = vadd.f32 %v1121_v39, %v3172_v18 }
 0x11e   :  { %v1222_v13 = vpop.f32.mrf.mxu0 }
 0x11f   :  { %v1171_v2 = vadd.f32 %v1170_v44, %v1122_v63 }
 0x120   :  { %v1511_v17 = vpop.f32.mrf.mxu1 }
 0x121   :  { %v1220_v62 = vadd.f32 %v1219_v32, %v1171_v2  ;;  %1559 = vmatmul.bf16.gmra.mxu2 %v2617_v54  ;;  %1657 = vmatmul.bf16.gmra.mxu0 %v3043_v12 }
 0x122   :  { %1608 = vmatmul.bf16.gmra.mxu3 %v3041_v19 }
 0x123   :  { %1706 = vmatmul.bf16.gmra.mxu1 %v3048_v23  ;;  %v3218_v25 = vadd.f32 %v1508_v57, %v1220_v62 }
 0x124   :  { %v1124_v35 = vpop.f32.mrf.mxu2 }
 0x125   :  { %v1173_v45 = vpop.f32.mrf.mxu3  ;;  %v1125_v7 = vadd.f32 %v1124_v35, %v3074_v51 }
 0x126   :  { %v1224_v18 = vpop.f32.mrf.mxu0 }
 0x127   :  { %v1174_v53 = vadd.f32 %v1173_v45, %v1125_v7 }
 0x128   :  { %v1513_v37 = vpop.f32.mrf.mxu1 }
 0x129   :  { %v1223_v16 = vadd.f32 %v1222_v13, %v1174_v53 }
 0x12b   :  { %v3221_v10 = vadd.f32 %v1511_v17, %v1223_v16  ;;  %v3492_v17 = vld [vmem:[#allocation2_spill] sm:$0xff] }
 0x12c   :  { %v1126_v24 = vpop.f32.mrf.mxu2 }
 0x12d   :  { %v1175_v54 = vpop.f32.mrf.mxu3  ;;  %v1127_v19 = vadd.f32 %v1126_v24, %v3081_v22 }
 0x12e   :  { %v1227_v12 = vpop.f32.mrf.mxu0 }
 0x12f   :  { %v1176_v4 = vadd.f32 %v1175_v54, %v1127_v19 }
 0x130   :  { %v1516_v30 = vpop.f32.mrf.mxu1 }
 0x131   :  { %v1225_v23 = vadd.f32 %v1224_v18, %v1176_v4  ;;  %1564 = vmatmul.bf16.gmra.mxu2 %v2738_v52  ;;  %1662 = vmatmul.bf16.gmra.mxu0 %v3085_v29 }
 0x132   :  { %1613 = vmatmul.bf16.gmra.mxu3 %v3083_v61 }
 0x133   :  { %1711 = vmatmul.bf16.gmra.mxu1 %v3090_v1  ;;  %v3228_v51 = vadd.f32 %v1513_v37, %v1225_v23 }
 0x134   :  { %v1129_v56 = vpop.f32.mrf.mxu2 }
 0x135   :  { %v1178_v58 = vpop.f32.mrf.mxu3  ;;  %v1130_v20 = vadd.f32 %v1129_v56, %v3116_v46 }
 0x136   :  { %v1229_v22 = vpop.f32.mrf.mxu0 }
 0x137   :  { %v1179_v9 = vadd.f32 %v1178_v58, %v1130_v20 }
 0x138   :  { %v1518_v3 = vpop.f32.mrf.mxu1 }
 0x139   :  { %v1228_v33 = vadd.f32 %v1227_v12, %v1179_v9  ;;  %v3260_v9 = vld [vmem:[%s3488_s3] ss:$0 sm:$0xff] }
 0x13b   :  { %v3231_v21 = vadd.f32 %v1516_v30, %v1228_v33 }
 0x13c   :  { %v1131_v27 = vpop.f32.mrf.mxu2 }
 0x13d   :  { %v1180_v52 = vpop.f32.mrf.mxu3  ;;  %v1132_v61 = vadd.f32 %v1131_v27, %v3123_v26 }
 0x13e   :  { %v1232_v29 = vpop.f32.mrf.mxu0 }
 0x13f   :  { %v1181_v31 = vadd.f32 %v1180_v52, %v1132_v61 }
 0x140   :  { %v1521_v5 = vpop.f32.mrf.mxu1 }
 0x141   :  { %v1230_v1 = vadd.f32 %v1229_v22, %v1181_v31  ;;  %1569 = vmatmul.bf16.gmra.mxu2 %v2802_v43  ;;  %1667 = vmatmul.bf16.gmra.mxu0 %v3127_v6 }
 0x142   :  { %1618 = vmatmul.bf16.gmra.mxu3 %v3125_v48 }
 0x143   :  { %1716 = vmatmul.bf16.gmra.mxu1 %v3132_v36  ;;  %v3238_v46 = vadd.f32 %v1518_v3, %v1230_v1 }
 0x144   :  { %v1134_v8 = vpop.f32.mrf.mxu2 }
 0x145   :  { %v1183_v42 = vpop.f32.mrf.mxu3  ;;  %v1135_v32 = vadd.f32 %v1134_v8, %v3152_v0 }
 0x146   :  { %v1234_v26 = vpop.f32.mrf.mxu0 }
 0x147   :  { %v1184_v57 = vadd.f32 %v1183_v42, %v1135_v32 }
 0x148   :  { %v1523_v15 = vpop.f32.mrf.mxu1 }
 0x149   :  { %v1233_v39 = vadd.f32 %v1232_v29, %v1184_v57 }
 0x14b   :  { %v3241_v44 = vadd.f32 %v1521_v5, %v1233_v39 }
 0x14c   :  { %v1136_v63 = vpop.f32.mrf.mxu2 }
 0x14d   :  { %v1185_v43 = vpop.f32.mrf.mxu3  ;;  %v1137_v48 = vadd.f32 %v1136_v63, %v3156_v38 }
 0x14e   :  { %v1237_v6 = vpop.f32.mrf.mxu0 }
 0x14f   :  { %v1186_v2 = vadd.f32 %v1185_v43, %v1137_v48 }
 0x150   :  { %v1526_v13 = vpop.f32.mrf.mxu1 }
 0x151   :  { %v1235_v36 = vadd.f32 %v1234_v26, %v1186_v2  ;;  %1574 = vmatmul.bf16.gmra.mxu2 %v3492_v17  ;;  %1672 = vmatmul.bf16.gmra.mxu0 %v3160_v49 }
 0x152   :  { %1623 = vmatmul.bf16.gmra.mxu3 %v3158_v41 }
 0x153   :  { %1721 = vmatmul.bf16.gmra.mxu1 %v3162_v55  ;;  %v3248_v0 = vadd.f32 %v1523_v15, %v1235_v36 }
 0x154   :  { %v1139_v62 = vpop.f32.mrf.mxu2 }
 0x155   :  { %v1188_v35 = vpop.f32.mrf.mxu3  ;;  %v1140_v45 = vadd.f32 %v1139_v62, %v3170_v60 }
 0x156   :  { %v1239_v38 = vpop.f32.mrf.mxu0 }
 0x157   :  { %v1189_v7 = vadd.f32 %v1188_v35, %v1140_v45 }
 0x158   :  { %v1528_v53 = vpop.f32.mrf.mxu1 }
 0x159   :  { %v1238_v18 = vadd.f32 %v1237_v6, %v1189_v7 }
 0x15b   :  { %v3251_v37 = vadd.f32 %v1526_v13, %v1238_v18 }
 0x15c   :  { %v1141_v16 = vpop.f32.mrf.mxu2 }
 0x15d   :  { %v1190_v24 = vpop.f32.mrf.mxu3  ;;  %v1142_v41 = vadd.f32 %v1141_v16, %v3174_v14 }
 0x15e   :  { %v1638_v49 = vpop.f32.mrf.mxu0 }
 0x15f   :  { %v1191_v54 = vadd.f32 %v1190_v24, %v1142_v41 }
 0x160   :  { %v1687_v19 = vpop.f32.mrf.mxu1 }
 0x161   :  { %v1240_v55 = vadd.f32 %v1239_v38, %v1191_v54 }
 0x163   :  { %v3254_v4 = vadd.f32 %v1528_v53, %v1240_v55 }
 0x164   :  { %v1540_v12 = vpop.f32.mrf.mxu2 }
 0x165   :  { %v1589_v30 = vpop.f32.mrf.mxu3  ;;  %v1541_v60 = vadd.f32 %v1540_v12, %v3181_v50 }
 0x166   :  { %v1640_v56 = vpop.f32.mrf.mxu0 }
 0x167   :  { %v1590_v23 = vadd.f32 %v1589_v30, %v1541_v60 }
 0x168   :  { %v1689_v58 = vpop.f32.mrf.mxu1 }
 0x169   :  { %v1639_v20 = vadd.f32 %v1638_v49, %v1590_v23 }
 0x16b   :  { %v1688_v14 = vadd.f32 %v1687_v19, %v1639_v20 }
 0x16c   :  { %v1542_v22 = vpop.f32.mrf.mxu2 }
 0x16d   :  { %v1591_v3 = vpop.f32.mrf.mxu3  ;;  %v1543_v33 = vadd.f32 %v1542_v22, %v3188_v59  ;;  %v3264_v27 = vadd.f32 %v3260_v9, %v1688_v14 }
 0x16e   :  { %v1643_v50 = vpop.f32.mrf.mxu0 }
 0x16f   :  { %v1592_v52 = vadd.f32 %v1591_v3, %v1543_v33  ;;  %1747 = vmax.xlane.f32.xlu0 %v3264_v27 }
 0x170   :  { %v1692_v61 = vpop.f32.mrf.mxu1 }
 0x171   :  { %v1641_v31 = vadd.f32 %v1640_v56, %v1592_v52 }
 0x173   :  { %v1690_v29 = vadd.f32 %v1689_v58, %v1641_v31 }
 0x174   :  { %v1545_v5 = vpop.f32.mrf.mxu2 }
 0x175   :  { %v1594_v1 = vpop.f32.mrf.mxu3  ;;  %v1546_v8 = vadd.f32 %v1545_v5, %v3191_v28  ;;  %v3269_v42 = vadd.f32 %v3260_v9, %v1690_v29 }
 0x176   :  { %v1645_v59 = vpop.f32.mrf.mxu0 }
 0x177   :  { %v1595_v32 = vadd.f32 %v1594_v1, %v1546_v8  ;;  %1749 = vmax.xlane.f32.xlu0 %v3269_v42 }
 0x178   :  { %v1694_v57 = vpop.f32.mrf.mxu1 }
 0x179   :  { %v1644_v26 = vadd.f32 %v1643_v50, %v1595_v32 }
 0x17b   :  { %v1693_v15 = vadd.f32 %v1692_v61, %v1644_v26 }
 0x17c   :  { %v1547_v39 = vpop.f32.mrf.mxu2 }
 0x17d   :  { %v1596_v63 = vpop.f32.mrf.mxu3  ;;  %v1548_v43 = vadd.f32 %v1547_v39, %v3198_v40  ;;  %v3274_v48 = vadd.f32 %v3260_v9, %v1693_v15 }
 0x17e   :  { %v1648_v28 = vpop.f32.mrf.mxu0 }
 0x17f   :  { %v1597_v2 = vadd.f32 %v1596_v63, %v1548_v43  ;;  %1751 = vmax.xlane.f32.xlu1 %v3274_v48 }
 0x180   :  { %v1697_v6 = vpop.f32.mrf.mxu1 }
 0x181   :  { %v1646_v13 = vadd.f32 %v1645_v59, %v1597_v2 }
 0x183   :  { %v1695_v36 = vadd.f32 %v1694_v57, %v1646_v13 }
 0x184   :  { %v1550_v17 = vpop.f32.mrf.mxu2 }
 0x185   :  { %v1599_v62 = vpop.f32.mrf.mxu3  ;;  %v1551_v35 = vadd.f32 %v1550_v17, %v3201_v47  ;;  %v3279_v45 = vadd.f32 %v3260_v9, %v1695_v36 }
 0x186   :  { %v1650_v40 = vpop.f32.mrf.mxu0 }
 0x187   :  { %v1600_v7 = vadd.f32 %v1599_v62, %v1551_v35  ;;  %1753 = vmax.xlane.f32.xlu1 %v3279_v45 }
 0x188   :  { %v1699_v38 = vpop.f32.mrf.mxu1 }
 0x189   :  { %v1649_v53 = vadd.f32 %v1648_v28, %v1600_v7 }
 0x18b   :  { %v1698_v18 = vadd.f32 %v1697_v6, %v1649_v53 }
 0x18c   :  { %v1552_v16 = vpop.f32.mrf.mxu2 }
 0x18d   :  { %v1601_v24 = vpop.f32.mrf.mxu3  ;;  %v1553_v41 = vadd.f32 %v1552_v16, %v3208_v11  ;;  %v3284_v54 = vadd.f32 %v3260_v9, %v1698_v18 }
 0x18e   :  { %v1653_v47 = vpop.f32.mrf.mxu0 }
 0x18f   :  { %v1602_v49 = vadd.f32 %v1601_v24, %v1553_v41  ;;  %1755 = vmax.xlane.f32.xlu2 %v3284_v54 }
 0x190   :  { %v1702_v19 = vpop.f32.mrf.mxu1 }
 0x191   :  { %v1651_v55 = vadd.f32 %v1650_v40, %v1602_v49 }
 0x193   :  { %v1700_v12 = vadd.f32 %v1699_v38, %v1651_v55 }
 0x194   :  { %v1555_v30 = vpop.f32.mrf.mxu2 }
 0x195   :  { %v1604_v60 = vpop.f32.mrf.mxu3  ;;  %v1556_v23 = vadd.f32 %v1555_v30, %v3211_v34  ;;  %v3289_v56 = vadd.f32 %v3260_v9, %v1700_v12 }
 0x196   :  { %v1655_v11 = vpop.f32.mrf.mxu0 }
 0x197   :  { %v1605_v58 = vadd.f32 %v1604_v60, %v1556_v23  ;;  %1757 = vmax.xlane.f32.xlu2 %v3289_v56 }
 0x198   :  { %v1704_v20 = vpop.f32.mrf.mxu1 }
 0x199   :  { %v1654_v14 = vadd.f32 %v1653_v47, %v1605_v58 }
 0x19b   :  { %v1703_v22 = vadd.f32 %v1702_v19, %v1654_v14 }
 0x19c   :  { %v1557_v3 = vpop.f32.mrf.mxu2 }
 0x19d   :  { %v1606_v33 = vpop.f32.mrf.mxu3  ;;  %v1558_v52 = vadd.f32 %v1557_v3, %v3218_v25  ;;  %v3294_v50 = vadd.f32 %v3260_v9, %v1703_v22 }
 0x19e   :  { %v1658_v34 = vpop.f32.mrf.mxu0 }
 0x19f   :  { %v1607_v61 = vadd.f32 %v1606_v33, %v1558_v52  ;;  %1759 = vmax.xlane.f32.xlu0 %v3294_v50 }
 0x1a0   :  { %v1707_v31 = vpop.f32.mrf.mxu1 }
 0x1a1   :  { %v1656_v29 = vadd.f32 %v1655_v11, %v1607_v61 }
 0x1a3   :  { %v1705_v5 = vadd.f32 %v1704_v20, %v1656_v29 }
 0x1a4   :  { %v1560_v1 = vpop.f32.mrf.mxu2 }
 0x1a5   :  { %v1609_v8 = vpop.f32.mrf.mxu3  ;;  %v1561_v32 = vadd.f32 %v1560_v1, %v3221_v10  ;;  %v3299_v59 = vadd.f32 %v3260_v9, %v1705_v5 }
 0x1a6   :  { %v1660_v25 = vpop.f32.mrf.mxu0 }
 0x1a7   :  { %v1610_v57 = vadd.f32 %v1609_v8, %v1561_v32  ;;  %1761 = vmax.xlane.f32.xlu1 %v3299_v59 }
 0x1a8   :  { %v1709_v26 = vpop.f32.mrf.mxu1 }
 0x1a9   :  { %v1659_v15 = vadd.f32 %v1658_v34, %v1610_v57 }
 0x1ab   :  { %v1708_v39 = vadd.f32 %v1707_v31, %v1659_v15 }
 0x1ac   :  { %v1562_v63 = vpop.f32.mrf.mxu2 }
 0x1ad   :  { %v1611_v43 = vpop.f32.mrf.mxu3  ;;  %v1563_v2 = vadd.f32 %v1562_v63, %v3228_v51  ;;  %v3304_v28 = vadd.f32 %v3260_v9, %v1708_v39 }
 0x1ae   :  { %v1663_v10 = vpop.f32.mrf.mxu0 }
 0x1af   :  { %v1612_v6 = vadd.f32 %v1611_v43, %v1563_v2  ;;  %1763 = vmax.xlane.f32.xlu2 %v3304_v28 }
 0x1b0   :  { %v1712_v13 = vpop.f32.mrf.mxu1 }
 0x1b1   :  { %v1661_v36 = vadd.f32 %v1660_v25, %v1612_v6 }
 0x1b3   :  { %v1710_v17 = vadd.f32 %v1709_v26, %v1661_v36 }
 0x1b4   :  { %v1565_v62 = vpop.f32.mrf.mxu2 }
 0x1b5   :  { %v1614_v35 = vpop.f32.mrf.mxu3  ;;  %v1566_v7 = vadd.f32 %v1565_v62, %v3231_v21  ;;  %v3309_v40 = vadd.f32 %v3260_v9, %v1710_v17 }
 0x1b6   :  { %v1665_v51 = vpop.f32.mrf.mxu0 }
 0x1b7   :  { %v1615_v38 = vadd.f32 %v1614_v35, %v1566_v7  ;;  %1765 = vmax.xlane.f32.xlu0 %v3309_v40 }
 0x1b8   :  { %v1714_v18 = vpop.f32.mrf.mxu1 }
 0x1b9   :  { %v1664_v53 = vadd.f32 %v1663_v10, %v1615_v38 }
 0x1bb   :  { %v1713_v16 = vadd.f32 %v1712_v13, %v1664_v53 }
 0x1bc   :  { %v1567_v24 = vpop.f32.mrf.mxu2 }
 0x1bd   :  { %v1616_v41 = vpop.f32.mrf.mxu3  ;;  %v1568_v49 = vadd.f32 %v1567_v24, %v3238_v46  ;;  %v3314_v47 = vadd.f32 %v3260_v9, %v1713_v16 }
 0x1be   :  { %v1668_v55 = vpop.f32.mrf.mxu0 }
 0x1bf   :  { %v1617_v19 = vadd.f32 %v1616_v41, %v1568_v49  ;;  %1767 = vmax.xlane.f32.xlu1 %v3314_v47 }
 0x1c0   :  { %v1717_v12 = vpop.f32.mrf.mxu1 }
 0x1c1   :  { %v1666_v21 = vadd.f32 %v1665_v51, %v1617_v19 }
 0x1c3   :  { %v1715_v30 = vadd.f32 %v1714_v18, %v1666_v21 }
 0x1c4   :  { %v1570_v60 = vpop.f32.mrf.mxu2 }
 0x1c5   :  { %v1619_v23 = vpop.f32.mrf.mxu3  ;;  %v1571_v58 = vadd.f32 %v1570_v60, %v3241_v44  ;;  %v3319_v11 = vadd.f32 %v3260_v9, %v1715_v30 }
 0x1c6   :  { %v1670_v14 = vpop.f32.mrf.mxu0 }
 0x1c7   :  { %v1620_v20 = vadd.f32 %v1619_v23, %v1571_v58  ;;  %1769 = vmax.xlane.f32.xlu2 %v3319_v11 }
 0x1c8   :  { %v1719_v34 = vpop.f32.mrf.mxu1 }
 0x1c9   :  { %v1669_v46 = vadd.f32 %v1668_v55, %v1620_v20 }
 0x1cb   :  { %v1718_v22 = vadd.f32 %v1717_v12, %v1669_v46 }
 0x1cc   :  { %v1572_v3 = vpop.f32.mrf.mxu2 }
 0x1cd   :  { %v1621_v33 = vpop.f32.mrf.mxu3  ;;  %v1573_v52 = vadd.f32 %v1572_v3, %v3248_v0  ;;  %v3324_v61 = vadd.f32 %v3260_v9, %v1718_v22 }
 0x1ce   :  { %v1673_v57 = vpop.f32.mrf.mxu0 }
 0x1cf   :  { %v1622_v31 = vadd.f32 %v1621_v33, %v1573_v52  ;;  %1771 = vmax.xlane.f32.xlu0 %v3324_v61 }
 0x1d0   :  { %v1722_v0 = vpop.f32.mrf.mxu1 }
 0x1d1   :  { %v1671_v44 = vadd.f32 %v1670_v14, %v1622_v31 }
 0x1d3   :  { %v1720_v29 = vadd.f32 %v1719_v34, %v1671_v44 }
 0x1d4   :  { %v1575_v5 = vpop.f32.mrf.mxu2 }
 0x1d5   :  { %v1624_v1 = vpop.f32.mrf.mxu3  ;;  %v1576_v8 = vadd.f32 %v1575_v5, %v3251_v37  ;;  %v3329_v32 = vadd.f32 %v3260_v9, %v1720_v29 }
 0x1d6   :  { %v1675_v37 = vpop.f32.mrf.mxu0 }
 0x1d7   :  { %v1625_v25 = vadd.f32 %v1624_v1, %v1576_v8  ;;  %1773 = vmax.xlane.f32.xlu1 %v3329_v32 }
 0x1d8   :  { %v1724_v13 = vpop.f32.mrf.mxu1 }
 0x1d9   :  { %v1674_v26 = vadd.f32 %v1673_v57, %v1625_v25 }
 0x1db   :  { %v1723_v15 = vadd.f32 %v1722_v0, %v1674_v26 }
 0x1dc   :  { %v1577_v39 = vpop.f32.mrf.mxu2 }
 0x1dd   :  { %v1578_v63 = vadd.f32 %v1577_v39, %v3254_v4  ;;  %v3334_v43 = vadd.f32 %v3260_v9, %v1723_v15  ;;  %v1626_v2 = vpop.f32.mrf.mxu3 }
 0x1df   :  { %v1627_v6 = vadd.f32 %v1626_v2, %v1578_v63  ;;  %1775 = vmax.xlane.f32.xlu2 %v3334_v43 }
 0x1e1   :  { %v1676_v10 = vadd.f32 %v1675_v37, %v1627_v6 }
 0x1e2   :  { %v3337_v36 = vpop.xlane.xlu0 %1747 }
 0x1e3   :  { %v1779_v17 = vsub.f32 %v3264_v27, %v3337_v36  ;;  %v1725_v62 = vadd.f32 %v1724_v13, %v1676_v10 }
 0x1e5   :  { %v1795_v35 = vmul.f32 1.442695, %v1779_v17  ;;  %v3342_v7 = vadd.f32 %v3260_v9, %v1725_v62 }
 0x1e7   :  { %2426 = vpow2.f32 %v1795_v35  ;;  %1777 = vmax.xlane.f32.xlu0 %v3342_v7 }
 0x1ea   :  { %v3345_v4 = vpop.xlane.xlu0 %1749 }
 0x1eb   :  { %v1780_v38 = vsub.f32 %v3269_v42, %v3345_v4 }
 0x1ed   :  { %v2427_v51 = vpop.eup %2426  ;;  %v1797_v53 = vmul.f32 1.442695, %v1780_v38 }
 0x1ee   :  { %1827 = vadd.xlane.f32.xlu1 %v2427_v51 }
 0x1ef   :  { %2428 = vpow2.f32 %v1797_v53 }
 0x1f2   :  { %v3349_v18 = vpop.xlane.xlu1 %1751 }
 0x1f3   :  { %v1781_v27 = vsub.f32 %v3274_v48, %v3349_v18 }
 0x1f5   :  { %v2429_v16 = vpop.eup %2428  ;;  %v1799_v9 = vmul.f32 1.442695, %v1781_v27 }
 0x1f6   :  { %1829 = vadd.xlane.f32.xlu2 %v2429_v16 }
 0x1f7   :  { %2430 = vpow2.f32 %v1799_v9 }
 0x1fa   :  { %v3353_v24 = vpop.xlane.xlu1 %1753 }
 0x1fb   :  { %v1782_v41 = vsub.f32 %v3279_v45, %v3353_v24 }
 0x1fd   :  { %v2431_v49 = vpop.eup %2430  ;;  %v1801_v42 = vmul.f32 1.442695, %v1782_v41 }
 0x1fe   :  { %1831 = vadd.xlane.f32.xlu0 %v2431_v49 }
 0x1ff   :  { %2432 = vpow2.f32 %v1801_v42 }
 0x202   :  { %v3357_v19 = vpop.xlane.xlu2 %1755 }
 0x203   :  { %v1783_v21 = vsub.f32 %v3284_v54, %v3357_v19 }
 0x205   :  { %v2433_v55 = vpop.eup %2432  ;;  %v1803_v48 = vmul.f32 1.442695, %v1783_v21 }
 0x206   :  { %1833 = vadd.xlane.f32.xlu1 %v2433_v55 }
 0x207   :  { %2434 = vpow2.f32 %v1803_v48 }
 0x20a   :  { %v3361_v12 = vpop.xlane.xlu2 %1757 }
 0x20b   :  { %v1784_v30 = vsub.f32 %v3289_v56, %v3361_v12 }
 0x20d   :  { %v2435_v60 = vpop.eup %2434  ;;  %v1805_v45 = vmul.f32 1.442695, %v1784_v30 }
 0x20e   :  { %1835 = vadd.xlane.f32.xlu2 %v2435_v60 }
 0x20f   :  { %2436 = vpow2.f32 %v1805_v45 }
 0x212   :  { %v3365_v23 = vpop.xlane.xlu0 %1759 }
 0x213   :  { %v1785_v58 = vsub.f32 %v3294_v50, %v3365_v23 }
 0x215   :  { %v2437_v20 = vpop.eup %2436  ;;  %v1807_v54 = vmul.f32 1.442695, %v1785_v58 }
 0x216   :  { %1837 = vadd.xlane.f32.xlu0 %v2437_v20 }
 0x217   :  { %2438 = vpow2.f32 %v1807_v54 }
 0x21a   :  { %v3369_v46 = vpop.xlane.xlu1 %1761 }
 0x21b   :  { %v1786_v14 = vsub.f32 %v3299_v59, %v3369_v46 }
 0x21d   :  { %v2439_v22 = vpop.eup %2438  ;;  %v1809_v56 = vmul.f32 1.442695, %v1786_v14 }
 0x21e   :  { %1839 = vadd.xlane.f32.xlu1 %v2439_v22 }
 0x21f   :  { %2440 = vpow2.f32 %v1809_v56 }
 0x222   :  { %v3373_v3 = vpop.xlane.xlu2 %1763 }
 0x223   :  { %v1787_v33 = vsub.f32 %v3304_v28, %v3373_v3 }
 0x225   :  { %v2441_v52 = vpop.eup %2440  ;;  %v1811_v50 = vmul.f32 1.442695, %v1787_v33 }
 0x226   :  { %1841 = vadd.xlane.f32.xlu2 %v2441_v52 }
 0x227   :  { %2442 = vpow2.f32 %v1811_v50 }
 0x22a   :  { %v3377_v34 = vpop.xlane.xlu0 %1765 }
 0x22b   :  { %v1788_v31 = vsub.f32 %v3309_v40, %v3377_v34 }
 0x22d   :  { %v2443_v44 = vpop.eup %2442  ;;  %v1813_v59 = vmul.f32 1.442695, %v1788_v31 }
 0x22e   :  { %1843 = vadd.xlane.f32.xlu0 %v2443_v44 }
 0x22f   :  { %2444 = vpow2.f32 %v1813_v59 }
 0x232   :  { %v3381_v29 = vpop.xlane.xlu1 %1767 }
 0x233   :  { %v1789_v5 = vsub.f32 %v3314_v47, %v3381_v29 }
 0x235   :  { %v2445_v1 = vpop.eup %2444  ;;  %v1815_v28 = vmul.f32 1.442695, %v1789_v5 }
 0x236   :  { %1845 = vadd.xlane.f32.xlu1 %v2445_v1 }
 0x237   :  { %2446 = vpow2.f32 %v1815_v28 }
 0x23a   :  { %v3385_v8 = vpop.xlane.xlu2 %1769 }
 0x23b   :  { %v1790_v57 = vsub.f32 %v3319_v11, %v3385_v8 }
 0x23d   :  { %v2447_v25 = vpop.eup %2446  ;;  %v1817_v40 = vmul.f32 1.442695, %v1790_v57 }
 0x23e   :  { %1847 = vadd.xlane.f32.xlu2 %v2447_v25 }
 0x23f   :  { %2448 = vpow2.f32 %v1817_v40 }
 0x242   :  { %v3389_v0 = vpop.xlane.xlu0 %1771 }
 0x243   :  { %v1791_v26 = vsub.f32 %v3324_v61, %v3389_v0 }
 0x245   :  { %v2449_v15 = vpop.eup %2448  ;;  %v1819_v47 = vmul.f32 1.442695, %v1791_v26 }
 0x246   :  { %1849 = vadd.xlane.f32.xlu0 %v2449_v15 }
 0x247   :  { %2450 = vpow2.f32 %v1819_v47 }
 0x24a   :  { %v3393_v39 = vpop.xlane.xlu1 %1773 }
 0x24b   :  { %v1792_v63 = vsub.f32 %v3329_v32, %v3393_v39 }
 0x24d   :  { %v2451_v2 = vpop.eup %2450  ;;  %v1821_v11 = vmul.f32 1.442695, %v1792_v63 }
 0x24e   :  { %1851 = vadd.xlane.f32.xlu1 %v2451_v2 }
 0x24f   :  { %2452 = vpow2.f32 %v1821_v11 }
 0x252   :  { %v3397_v6 = vpop.xlane.xlu2 %1775 }
 0x253   :  { %v1793_v37 = vsub.f32 %v3334_v43, %v3397_v6 }
 0x255   :  { %v2453_v10 = vpop.eup %2452  ;;  %v1823_v61 = vmul.f32 1.442695, %v1793_v37 }
 0x256   :  { %1853 = vadd.xlane.f32.xlu2 %v2453_v10 }
 0x257   :  { %2454 = vpow2.f32 %v1823_v61 }
 0x25a   :  { %v3401_v13 = vpop.xlane.xlu0 %1777 }
 0x25b   :  { %v1794_v17 = vsub.f32 %v3342_v7, %v3401_v13 }
 0x25d   :  { %v2455_v62 = vpop.eup %2454  ;;  %v1825_v32 = vmul.f32 1.442695, %v1794_v17 }
 0x25e   :  { %1855 = vadd.xlane.f32.xlu0 %v2455_v62 }
 0x25f   :  { %2456 = vpow2.f32 %v1825_v32 }
 0x261   :  { %v1828_v35 = vpop.xlane.xlu1 %1827 }
 0x262   :  { %2458 = vlog2.f32 %v1828_v35 }
 0x265   :  { %v2457_v38 = vpop.eup %2456 }
 0x266   :  { %1857 = vadd.xlane.f32.xlu1 %v2457_v38 }
 0x268   :  { %v2459_v51 = vpop.eup %2458 }
 0x269   :  { %v1860_v53 = vmul.f32 0.6931472, %v2459_v51  ;;  %v1830_v43 = vpop.xlane.xlu2 %1829 }
 0x26a   :  { %2460 = vlog2.f32 %v1830_v43 }
 0x26b   :  { %v1891_v27 = vadd.f32 %v1860_v53, %v3337_v36 }
 0x26d   :  { %1908 = vst.msk [vmem:[%s3489_s4] sm:$0xff] %vm1907_vm0, %v1891_v27 }
 0x270   :  { %v2461_v7 = vpop.eup %2460 }
 0x271   :  { %v1862_v16 = vmul.f32 0.6931472, %v2461_v7  ;;  %v1832_v9 = vpop.xlane.xlu0 %1831 }
 0x272   :  { %2462 = vlog2.f32 %v1832_v9 }
 0x273   :  { %v1892_v41 = vadd.f32 %v1862_v16, %v3345_v4 }
 0x275   :  { %1909 = vst.msk [vmem:[%s3489_s4 + $0x8] sm:$0xff] %vm1907_vm0, %v1892_v41 }
 0x278   :  { %v2463_v49 = vpop.eup %2462 }
 0x279   :  { %v1864_v42 = vmul.f32 0.6931472, %v2463_v49  ;;  %v1834_v21 = vpop.xlane.xlu1 %1833 }
 0x27a   :  { %2464 = vlog2.f32 %v1834_v21 }
 0x27b   :  { %v1893_v36 = vadd.f32 %v1864_v42, %v3349_v18 }
 0x27d   :  { %1910 = vst.msk [vmem:[%s3489_s4 + $0x10] sm:$0xff] %vm1907_vm0, %v1893_v36 }
 0x280   :  { %v2465_v55 = vpop.eup %2464 }
 0x281   :  { %v1866_v48 = vmul.f32 0.6931472, %v2465_v55  ;;  %v1836_v30 = vpop.xlane.xlu2 %1835 }
 0x282   :  { %2466 = vlog2.f32 %v1836_v30 }
 0x283   :  { %v1894_v4 = vadd.f32 %v1866_v48, %v3353_v24 }
 0x285   :  { %1911 = vst.msk [vmem:[%s3489_s4 + $0x18] sm:$0xff] %vm1907_vm0, %v1894_v4 }
 0x288   :  { %v2467_v60 = vpop.eup %2466 }
 0x289   :  { %v1868_v45 = vmul.f32 0.6931472, %v2467_v60  ;;  %v1838_v58 = vpop.xlane.xlu0 %1837 }
 0x28a   :  { %2468 = vlog2.f32 %v1838_v58 }
 0x28b   :  { %v1895_v18 = vadd.f32 %v1868_v45, %v3357_v19 }
 0x28d   :  { %1912 = vst.msk [vmem:[%s3489_s4 + $0x20] sm:$0xff] %vm1907_vm0, %v1895_v18 }
 0x290   :  { %v2469_v20 = vpop.eup %2468 }
 0x291   :  { %v1870_v54 = vmul.f32 0.6931472, %v2469_v20  ;;  %v1840_v14 = vpop.xlane.xlu1 %1839 }
 0x292   :  { %2470 = vlog2.f32 %v1840_v14 }
 0x293   :  { %v1896_v24 = vadd.f32 %v1870_v54, %v3361_v12 }
 0x295   :  { %1913 = vst.msk [vmem:[%s3489_s4 + $0x28] sm:$0xff] %vm1907_vm0, %v1896_v24 }
 0x298   :  { %v2471_v22 = vpop.eup %2470 }
 0x299   :  { %v1872_v56 = vmul.f32 0.6931472, %v2471_v22  ;;  %v1842_v33 = vpop.xlane.xlu2 %1841 }
 0x29a   :  { %2472 = vlog2.f32 %v1842_v33 }
 0x29b   :  { %v1897_v19 = vadd.f32 %v1872_v56, %v3365_v23 }
 0x29d   :  { %1914 = vst.msk [vmem:[%s3489_s4 + $0x30] sm:$0xff] %vm1907_vm0, %v1897_v19 }
 0x2a0   :  { %v2473_v52 = vpop.eup %2472 }
 0x2a1   :  { %v1874_v50 = vmul.f32 0.6931472, %v2473_v52  ;;  %v1844_v31 = vpop.xlane.xlu0 %1843 }
 0x2a2   :  { %2474 = vlog2.f32 %v1844_v31 }
 0x2a3   :  { %v1898_v12 = vadd.f32 %v1874_v50, %v3369_v46 }
 0x2a5   :  { %1915 = vst.msk [vmem:[%s3489_s4 + $0x38] sm:$0xff] %vm1907_vm0, %v1898_v12 }
 0x2a8   :  { %v2475_v44 = vpop.eup %2474 }
 0x2a9   :  { %v1876_v59 = vmul.f32 0.6931472, %v2475_v44  ;;  %v1846_v5 = vpop.xlane.xlu1 %1845 }
 0x2aa   :  { %2476 = vlog2.f32 %v1846_v5 }
 0x2ab   :  { %v1899_v23 = vadd.f32 %v1876_v59, %v3373_v3 }
 0x2ad   :  { %1916 = vst.msk [vmem:[%s3489_s4 + $0x40] sm:$0xff] %vm1907_vm0, %v1899_v23 }
 0x2b0   :  { %v2477_v1 = vpop.eup %2476 }
 0x2b1   :  { %v1878_v28 = vmul.f32 0.6931472, %v2477_v1  ;;  %v1848_v57 = vpop.xlane.xlu2 %1847 }
 0x2b2   :  { %2478 = vlog2.f32 %v1848_v57 }
 0x2b3   :  { %v1900_v46 = vadd.f32 %v1878_v28, %v3377_v34 }
 0x2b5   :  { %1917 = vst.msk [vmem:[%s3489_s4 + $0x48] sm:$0xff] %vm1907_vm0, %v1900_v46 }
 0x2b8   :  { %v2479_v25 = vpop.eup %2478 }
 0x2b9   :  { %v1880_v40 = vmul.f32 0.6931472, %v2479_v25  ;;  %v1850_v26 = vpop.xlane.xlu0 %1849 }
 0x2ba   :  { %2480 = vlog2.f32 %v1850_v26 }
 0x2bb   :  { %v1901_v3 = vadd.f32 %v1880_v40, %v3381_v29 }
 0x2bd   :  { %1918 = vst.msk [vmem:[%s3489_s4 + $0x50] sm:$0xff] %vm1907_vm0, %v1901_v3 }
 0x2c0   :  { %v2481_v15 = vpop.eup %2480 }
 0x2c1   :  { %v1882_v47 = vmul.f32 0.6931472, %v2481_v15  ;;  %v1852_v63 = vpop.xlane.xlu1 %1851 }
 0x2c2   :  { %2482 = vlog2.f32 %v1852_v63 }
 0x2c3   :  { %v1902_v34 = vadd.f32 %v1882_v47, %v3385_v8 }
 0x2c5   :  { %1919 = vst.msk [vmem:[%s3489_s4 + $0x58] sm:$0xff] %vm1907_vm0, %v1902_v34 }
 0x2c8   :  { %v2483_v2 = vpop.eup %2482 }
 0x2c9   :  { %v1884_v11 = vmul.f32 0.6931472, %v2483_v2  ;;  %v1854_v37 = vpop.xlane.xlu2 %1853 }
 0x2ca   :  { %2484 = vlog2.f32 %v1854_v37 }
 0x2cb   :  { %v1903_v29 = vadd.f32 %v1884_v11, %v3389_v0 }
 0x2cd   :  { %1920 = vst.msk [vmem:[%s3489_s4 + $0x60] sm:$0xff] %vm1907_vm0, %v1903_v29 }
 0x2d0   :  { %v2485_v10 = vpop.eup %2484 }
 0x2d1   :  { %v1886_v61 = vmul.f32 0.6931472, %v2485_v10  ;;  %v1856_v17 = vpop.xlane.xlu0 %1855 }
 0x2d2   :  { %2486 = vlog2.f32 %v1856_v17 }
 0x2d3   :  { %v1904_v8 = vadd.f32 %v1886_v61, %v3393_v39 }
 0x2d5   :  { %1921 = vst.msk [vmem:[%s3489_s4 + $0x68] sm:$0xff] %vm1907_vm0, %v1904_v8 }
 0x2d8   :  { %v2487_v62 = vpop.eup %2486 }
 0x2d9   :  { %v1888_v32 = vmul.f32 0.6931472, %v2487_v62  ;;  %v1858_v35 = vpop.xlane.xlu1 %1857 }
 0x2da   :  { %2488 = vlog2.f32 %v1858_v35 }
 0x2db   :  { %v1905_v0 = vadd.f32 %v1888_v32, %v3397_v6 }
 0x2dd   :  { %1922 = vst.msk [vmem:[%s3489_s4 + $0x70] sm:$0xff] %vm1907_vm0, %v1905_v0 }
 0x2e0   :  { %v2489_v38 = vpop.eup %2488 }
 0x2e1   :  { %v1890_v51 = vmul.f32 0.6931472, %v2489_v38 }
 0x2e3   :  { %v1906_v39 = vadd.f32 %v1890_v51, %v3401_v13 }
 0x2e5   :  { %1923 = vst.msk [vmem:[%s3489_s4 + $0x78] sm:$0xff] %vm1907_vm0, %v1906_v39 }

</bundles_post_ra>
